<compile_context>
chip_gen: v5e
topology: v5e:2x2
jax: 0.10.0
libtpu: 0.0.40
codegen_flags: <defaults>
</compile_context>

<pallas_src>
import jax
import jax.numpy as jnp
from jax import lax
from jax.experimental import pallas as pl
from jax.experimental.pallas import tpu as pltpu

_HIDDEN = 32           # conv width of the torch module
_KREP = 3 * _HIDDEN    # 96: kx-folded contraction width of layers 2-4
_CHUNK = 256           # M-tile (flat output rows) per matmul chunk


def _chunks(n_rows, chunk=_CHUNK):
    out, s = [], 0
    while s < n_rows:
        out.append((s, min(chunk, n_rows - s)))
        s += chunk
    return out


def _make_encoder_kernel(block_b, wst, heights, k1):
    """Fused 4-layer conv kernel for one batch tile.

    block_b : images per grid step
    wst     : storage row-stride (stored columns per feature-map row) = ow1
    heights : (oh1, oh2, oh3, oh4) valid output heights of the 4 layers
    k1      : (padded) contraction width of the im2col'ed first layer
    """
    oh1, oh2, oh3, oh4 = heights
    rows = [oh * wst for oh in heights]          # flat rows of each stored map

    def kernel(x_ref, w1_ref, w2_ref, w3_ref, w4_ref, b_ref, out_ref,
               f1, f2, f3):
        # x_ref : (block_b, rows[0], k1)  bf16  -- im2col'ed stride-2 input
        # w1_ref: (k1, 32)                bf16
        # wN_ref: (3, 96, 32)             bf16  -- [ky][kx*32 + cin][cout]
        # b_ref : (4, 32)                 f32
        # out_ref: (block_b, rows[3], 32) f32   -- wide rows=(h,w), ch minor
        # f1..f3: (rows[l], 96)           bf16  -- kx-replicated feature maps

        # Entries of the replicated maps that would reference rows past the
        # end of a layer's output are never written; zero them once per grid
        # step (they only ever feed garbage columns, keep them finite).
        tail = jnp.zeros((2, _KREP), jnp.bfloat16)
        f1[rows[0] - 2:rows[0], :] = tail
        f2[rows[1] - 2:rows[1], :] = tail
        f3[rows[2] - 2:rows[2], :] = tail

        b_all = b_ref[...]                       # (4, 32) f32, read once

        def replicate(f, n_rows):
            # lane group kx of row r holds the map value of row r + kx
            for s, n in _chunks(n_rows - 1):
                f[s:s + n, _HIDDEN:2 * _HIDDEN] = f[s + 1:s + 1 + n, 0:_HIDDEN]
            for s, n in _chunks(n_rows - 2):
                f[s:s + n, 2 * _HIDDEN:3 * _HIDDEN] = f[s + 2:s + 2 + n, 0:_HIDDEN]

        def conv_s1(src, w_ref, bias, n_out_rows, store):
            # stride-1 3x3 conv as 3 accumulating K=96 matmuls per M-chunk
            for s, n in _chunks(n_out_rows):
                acc = jnp.dot(src[s:s + n, :], w_ref[0],
                              preferred_element_type=jnp.float32)
                acc = acc + jnp.dot(src[wst + s:wst + s + n, :], w_ref[1],
                                    preferred_element_type=jnp.float32)
                acc = acc + jnp.dot(src[2 * wst + s:2 * wst + s + n, :], w_ref[2],
                                    preferred_element_type=jnp.float32)
                store(s, n, jnp.maximum(acc + bias, 0.0))

        def body(bi, carry):
            # ---- layer 1: stride 2, pre-im2col'ed -> one fat matmul / chunk --
            for s, n in _chunks(rows[0]):
                acc = jnp.dot(x_ref[bi, s:s + n, :], w1_ref[...],
                              preferred_element_type=jnp.float32)
                y = jnp.maximum(acc + b_all[0:1, :], 0.0)
                f1[s:s + n, 0:_HIDDEN] = y.astype(jnp.bfloat16)
            replicate(f1, rows[0])

            # ---- layers 2 and 3: stride 1, everything stays in VMEM ----------
            def store_f2(s, n, y):
                f2[s:s + n, 0:_HIDDEN] = y.astype(jnp.bfloat16)
            conv_s1(f1, w2_ref, b_all[1:2, :], rows[1], store_f2)
            replicate(f2, rows[1])

            def store_f3(s, n, y):
                f3[s:s + n, 0:_HIDDEN] = y.astype(jnp.bfloat16)
            conv_s1(f2, w3_ref, b_all[2:3, :], rows[2], store_f3)
            replicate(f3, rows[2])

            # ---- layer 4: stream straight to the output block ----------------
            def store_out(s, n, y):
                out_ref[bi, s:s + n, :] = y
            conv_s1(f3, w4_ref, b_all[3:4, :], rows[3], store_out)
            return carry

        lax.fori_loop(0, block_b, body, 0)

    return kernel


def _pick_block_b(batch, per_image_vmem_bytes, budget_bytes):
    """Largest batch tile (<= 8) that keeps double-buffered in+out under budget."""
    best = 1
    for bb in range(1, min(8, batch) + 1):
        if batch % bb == 0 and 2 * bb * per_image_vmem_bytes <= budget_bytes:
            best = bb
    # keep at least 2 grid steps when possible so both TensorCores get work
    while best > 1 and batch // best < 2:
        best -= 1
        while batch % best:
            best -= 1
    return best


@jax.jit
def encoder_forward(obs, params):
    """obs: (B, T, C, H, W) f32 -> (B, 32*OH4*OW4) f32 (torch NCHW flatten)."""
    B, T, C, H, W = obs.shape
    c0 = T * C
    oh1, ow1 = (H - 3) // 2 + 1, (W - 3) // 2 + 1     # 3x3, stride 2, VALID
    oh2, ow2 = oh1 - 2, ow1 - 2                       # 3x3, stride 1, VALID
    oh3, ow3 = oh2 - 2, ow2 - 2
    oh4, ow4 = oh3 - 2, ow3 - 2
    assert oh4 >= 1 and ow4 >= 1, "input spatial size too small"
    wst = ow1                                         # storage row-stride of all maps
    rows1, rows4 = oh1 * wst, oh4 * wst
    k1 = 9 * c0
    k1p = -(-k1 // 16) * 16                           # pad K to a bf16 sublane tile

    # ---- XLA prologue: im2col the stride-2 first layer, bf16 staging --------
    x = obs.reshape(B, c0, H, W).transpose(0, 2, 3, 1)            # (B, H, W, c0)
    patches = [x[:, ky:ky + 2 * oh1:2, kx:kx + 2 * ow1:2, :]
               for ky in range(3) for kx in range(3)]
    xim = jnp.concatenate(patches, axis=-1).reshape(B, rows1, k1)
    if k1p > k1:
        xim = jnp.pad(xim, ((0, 0), (0, 0), (0, k1p - k1)))
    xim = xim.astype(jnp.bfloat16)

    # ---- weights: layer 1 (9*c0, 32); layers 2-4 kx-folded (3, 96, 32) ------
    w1 = jnp.transpose(params[0][0], (2, 3, 1, 0)).reshape(k1, _HIDDEN)
    w1 = jnp.pad(w1, ((0, k1p - k1), (0, 0))).astype(jnp.bfloat16)
    wf = [jnp.transpose(w, (2, 3, 1, 0)).reshape(3, _KREP, _HIDDEN).astype(jnp.bfloat16)
          for (w, _) in params[1:]]
    bmat = jnp.stack([b for (_, b) in params]).astype(jnp.float32)

    # ---- batch tiling: big tiles amortize grid overhead, bounded by VMEM ----
    bytes_in = rows1 * 128 * 2            # lane-padded bf16 input block / image
    bytes_out = rows4 * 128 * 4           # lane-padded f32 output block / image
    block_b = _pick_block_b(B, bytes_in + bytes_out,
                            budget_bytes=22 * 1024 * 1024)

    kernel = _make_encoder_kernel(block_b, wst, (oh1, oh2, oh3, oh4), k1p)

    out = pl.pallas_call(
        kernel,
        out_shape=jax.ShapeDtypeStruct((B, rows4, _HIDDEN), jnp.float32),
        grid=(B // block_b,),
        in_specs=[
            pl.BlockSpec((block_b, rows1, k1p), lambda i: (i, 0, 0)),
            pl.BlockSpec((k1p, _HIDDEN), lambda i: (0, 0)),
            pl.BlockSpec((3, _KREP, _HIDDEN), lambda i: (0, 0, 0)),
            pl.BlockSpec((3, _KREP, _HIDDEN), lambda i: (0, 0, 0)),
            pl.BlockSpec((3, _KREP, _HIDDEN), lambda i: (0, 0, 0)),
            pl.BlockSpec((4, _HIDDEN), lambda i: (0, 0)),
        ],
        out_specs=pl.BlockSpec((block_b, rows4, _HIDDEN), lambda i: (i, 0, 0)),
        scratch_shapes=[
            pltpu.VMEM((oh1 * wst, _KREP), jnp.bfloat16),
            pltpu.VMEM((oh2 * wst, _KREP), jnp.bfloat16),
            pltpu.VMEM((oh3 * wst, _KREP), jnp.bfloat16),
        ],
        compiler_params=pltpu.CompilerParams(
            dimension_semantics=("parallel",),
            vmem_limit_bytes=32 * 1024 * 1024),
    )(xim, w1, wf[0], wf[1], wf[2], bmat)

    # crop the wide columns and reproduce torch's NCHW `h.view(B, -1)` order
    out = out.reshape(B, oh4, wst, _HIDDEN)[:, :, :ow4, :]
    return jnp.transpose(out, (0, 3, 1, 2)).reshape(B, _HIDDEN * oh4 * ow4)


def init_encoder_params(key, in_channels, hidden=_HIDDEN):
    """Synthetic parameters with the same shapes as the torch module."""
    params = []
    cin = in_channels
    for _ in range(4):
        key, kw, kb = jax.random.split(key, 3)
        fan_in = cin * 9
        w = jax.random.normal(kw, (hidden, cin, 3, 3), jnp.float32) / jnp.sqrt(fan_in)
        b = jax.random.normal(kb, (hidden,), jnp.float32) * 0.01
        params.append((w, b))
        cin = hidden
    return params


def _reference_forward(obs, params):
    """Pure-JAX reference (lax.conv) using the same bf16-matmul / f32-epilogue recipe."""
    B, T, C, H, W = obs.shape
    x = obs.reshape(B, T * C, H, W)
    for (w, b), s in zip(params, (2, 1, 1, 1)):
        y = lax.conv_general_dilated(
            x.astype(jnp.bfloat16), w.astype(jnp.bfloat16),
            window_strides=(s, s), padding="VALID",
            dimension_numbers=("NCHW", "OIHW", "NCHW"),
            preferred_element_type=jnp.float32)
        x = jnp.maximum(y + b[None, :, None, None], 0.0)
    return x.reshape(B, -1)


if __name__ == "__main__":
    key = jax.random.PRNGKey(0)
    k_obs, k_par = jax.random.split(key)

    # Small shapes consistent with the module: obs_space.shape = (T, C, H, W).
    B, T, C, H, W = 4, 3, 3, 20, 20        # spatial: 20 ->(s2) 9 -> 7 -> 5 -> 3
    obs = jax.random.normal(k_obs, (B, T, C, H, W), jnp.float32)
    params = init_encoder_params(k_par, in_channels=T * C)

    out = jax.block_until_ready(encoder_forward(obs, params))
    ref = _reference_forward(obs, params)

    assert out.shape == (B, _HIDDEN * 3 * 3), out.shape
    max_err = float(jnp.max(jnp.abs(out - ref)))
    assert jnp.allclose(out, ref, atol=2e-2, rtol=2e-2), f"mismatch, max abs err = {max_err}"

    print("KERNEL_OK")
</pallas_src>

<mosaic_0001>
module attributes {stable_mosaic.version = 11 : i64} {
  func.func @kernel(%arg0: i32, %arg1: memref<2x81x96xbf16, #tpu.memory_space<vmem>>, %arg2: memref<96x32xbf16, #tpu.memory_space<vmem>>, %arg3: memref<3x96x32xbf16, #tpu.memory_space<vmem>>, %arg4: memref<3x96x32xbf16, #tpu.memory_space<vmem>>, %arg5: memref<3x96x32xbf16, #tpu.memory_space<vmem>>, %arg6: memref<4x32xf32, #tpu.memory_space<vmem>>, %arg7: memref<2x27x32xf32, #tpu.memory_space<vmem>>, %arg8: memref<81x96xbf16, #tpu.memory_space<vmem>>, %arg9: memref<63x96xbf16, #tpu.memory_space<vmem>>, %arg10: memref<45x96xbf16, #tpu.memory_space<vmem>>) attributes {dimension_semantics = [#tpu.dimension_semantics<parallel>], iteration_bounds = array<i64: 2>, scalar_prefetch = 0 : i64, scratch_operands = 3 : i64, tpu.core_type = #tpu.core_type<tc>, window_params = [{transform_indices = @transform_0, window_bounds = array<i64: 2, 81, 96>}, {pipeline_mode = #tpu.pipeline_mode<synchronous>, transform_indices = @transform_1, window_bounds = array<i64: 96, 32>}, {pipeline_mode = #tpu.pipeline_mode<synchronous>, transform_indices = @transform_2, window_bounds = array<i64: 3, 96, 32>}, {pipeline_mode = #tpu.pipeline_mode<synchronous>, transform_indices = @transform_3, window_bounds = array<i64: 3, 96, 32>}, {pipeline_mode = #tpu.pipeline_mode<synchronous>, transform_indices = @transform_4, window_bounds = array<i64: 3, 96, 32>}, {pipeline_mode = #tpu.pipeline_mode<synchronous>, transform_indices = @transform_5, window_bounds = array<i64: 4, 32>}, {transform_indices = @transform_6, window_bounds = array<i64: 2, 27, 32>}]} {
    %cst = arith.constant 0.000000e+00 : bf16
    %0 = vector.broadcast %cst : bf16 to vector<2x96xbf16>
    %c79 = arith.constant 79 : index
    %c0 = arith.constant 0 : index
    %1 = vector.load %arg8[%c79, %c0] : memref<81x96xbf16, #tpu.memory_space<vmem>>, vector<2x96xbf16>
    tpu.vector_store %arg8[%c79, %c0], %0 {strides = array<i32>} : memref<81x96xbf16, #tpu.memory_space<vmem>>, vector<2x96xbf16>,
    %c61 = arith.constant 61 : index
    %c0_0 = arith.constant 0 : index
    %2 = vector.load %arg9[%c61, %c0_0] : memref<63x96xbf16, #tpu.memory_space<vmem>>, vector<2x96xbf16>
    tpu.vector_store %arg9[%c61, %c0_0], %0 {strides = array<i32>} : memref<63x96xbf16, #tpu.memory_space<vmem>>, vector<2x96xbf16>,
    %c43 = arith.constant 43 : index
    %c0_1 = arith.constant 0 : index
    %3 = vector.load %arg10[%c43, %c0_1] : memref<45x96xbf16, #tpu.memory_space<vmem>>, vector<2x96xbf16>
    tpu.vector_store %arg10[%c43, %c0_1], %0 {strides = array<i32>} : memref<45x96xbf16, #tpu.memory_space<vmem>>, vector<2x96xbf16>,
    %c0_2 = arith.constant 0 : index
    %c0_3 = arith.constant 0 : index
    %4 = vector.load %arg6[%c0_2, %c0_3] : memref<4x32xf32, #tpu.memory_space<vmem>>, vector<4x32xf32>
    %c0_i32 = arith.constant 0 : i32
    %c2_i32 = arith.constant 2 : i32
    %5 = arith.addi %c0_i32, %c2_i32 : i32
    %c1_i32 = arith.constant 1 : i32
    scf.for %arg11 = %c0_i32 to %5 step %c1_i32  : i32 {
      %6 = arith.index_cast %arg11 : i32 to index
      %c0_5 = arith.constant 0 : index
      %c0_6 = arith.constant 0 : index
      %7 = vector.load %arg1[%6, %c0_5, %c0_6] : memref<2x81x96xbf16, #tpu.memory_space<vmem>>, vector<1x81x96xbf16>
      %8 = vector.shape_cast %7 : vector<1x81x96xbf16> to vector<81x96xbf16>
      %c0_7 = arith.constant 0 : index
      %c0_8 = arith.constant 0 : index
      %9 = vector.load %arg2[%c0_7, %c0_8] : memref<96x32xbf16, #tpu.memory_space<vmem>>, vector<96x32xbf16>
      %cst_9 = arith.constant dense<0.000000e+00> : vector<81x32xf32>
      %10 = tpu.matmul %8, %9, %cst_9 {dimension_numbers = #tpu.dot_dimension_numbers<[1], [0], [0], [1], [0, 0, 1, 1], [], []>} : vector<81x96xbf16>, vector<96x32xbf16>, vector<81x32xf32> -> vector<81x32xf32>
      %11 = vector.extract_strided_slice %4 {offsets = [0, 0], sizes = [1, 32], strides = [1, 1]} : vector<4x32xf32> to vector<1x32xf32>
      %12 = vector.broadcast %11 : vector<1x32xf32> to vector<81x32xf32>
      %13 = arith.addf %10, %12 : vector<81x32xf32>
      %cst_10 = arith.constant 0.000000e+00 : f32
      %14 = vector.broadcast %cst_10 : f32 to vector<81x32xf32>
      %15 = arith.maximumf %13, %14 : vector<81x32xf32>
      %16 = arith.truncf %15 : vector<81x32xf32> to vector<81x32xbf16>
      %c0_11 = arith.constant 0 : index
      %c0_12 = arith.constant 0 : index
      %17 = vector.load %arg8[%c0_11, %c0_12] : memref<81x96xbf16, #tpu.memory_space<vmem>>, vector<81x32xbf16>
      tpu.vector_store %arg8[%c0_11, %c0_12], %16 {strides = array<i32>} : memref<81x96xbf16, #tpu.memory_space<vmem>>, vector<81x32xbf16>,
      %c1 = arith.constant 1 : index
      %c0_13 = arith.constant 0 : index
      %18 = vector.load %arg8[%c1, %c0_13] : memref<81x96xbf16, #tpu.memory_space<vmem>>, vector<80x32xbf16>
      %c0_14 = arith.constant 0 : index
      %c32 = arith.constant 32 : index
      %19 = vector.load %arg8[%c0_14, %c32] : memref<81x96xbf16, #tpu.memory_space<vmem>>, vector<80x32xbf16>
      tpu.vector_store %arg8[%c0_14, %c32], %18 {strides = array<i32>} : memref<81x96xbf16, #tpu.memory_space<vmem>>, vector<80x32xbf16>,
      %c2 = arith.constant 2 : index
      %c0_15 = arith.constant 0 : index
      %20 = vector.load %arg8[%c2, %c0_15] : memref<81x96xbf16, #tpu.memory_space<vmem>>, vector<79x32xbf16>
      %c0_16 = arith.constant 0 : index
      %c64 = arith.constant 64 : index
      %21 = vector.load %arg8[%c0_16, %c64] : memref<81x96xbf16, #tpu.memory_space<vmem>>, vector<79x32xbf16>
      tpu.vector_store %arg8[%c0_16, %c64], %20 {strides = array<i32>} : memref<81x96xbf16, #tpu.memory_space<vmem>>, vector<79x32xbf16>,
      %22 = vector.extract_strided_slice %4 {offsets = [1, 0], sizes = [1, 32], strides = [1, 1]} : vector<4x32xf32> to vector<1x32xf32>
      %c0_17 = arith.constant 0 : index
      %c0_18 = arith.constant 0 : index
      %23 = vector.load %arg8[%c0_17, %c0_18] : memref<81x96xbf16, #tpu.memory_space<vmem>>, vector<63x96xbf16>
      %c0_19 = arith.constant 0 : index
      %c0_20 = arith.constant 0 : index
      %c0_21 = arith.constant 0 : index
      %24 = vector.load %arg3[%c0_19, %c0_20, %c0_21] : memref<3x96x32xbf16, #tpu.memory_space<vmem>>, vector<1x96x32xbf16>
      %25 = vector.shape_cast %24 : vector<1x96x32xbf16> to vector<96x32xbf16>
      %cst_22 = arith.constant dense<0.000000e+00> : vector<63x32xf32>
      %26 = tpu.matmul %23, %25, %cst_22 {dimension_numbers = #tpu.dot_dimension_numbers<[1], [0], [0], [1], [0, 0, 1, 1], [], []>} : vector<63x96xbf16>, vector<96x32xbf16>, vector<63x32xf32> -> vector<63x32xf32>
      %c9 = arith.constant 9 : index
      %c0_23 = arith.constant 0 : index
      %27 = vector.load %arg8[%c9, %c0_23] : memref<81x96xbf16, #tpu.memory_space<vmem>>, vector<63x96xbf16>
      %c1_24 = arith.constant 1 : index
      %c0_25 = arith.constant 0 : index
      %c0_26 = arith.constant 0 : index
      %28 = vector.load %arg3[%c1_24, %c0_25, %c0_26] : memref<3x96x32xbf16, #tpu.memory_space<vmem>>, vector<1x96x32xbf16>
      %29 = vector.shape_cast %28 : vector<1x96x32xbf16> to vector<96x32xbf16>
      %cst_27 = arith.constant dense<0.000000e+00> : vector<63x32xf32>
      %30 = tpu.matmul %27, %29, %cst_27 {dimension_numbers = #tpu.dot_dimension_numbers<[1], [0], [0], [1], [0, 0, 1, 1], [], []>} : vector<63x96xbf16>, vector<96x32xbf16>, vector<63x32xf32> -> vector<63x32xf32>
      %31 = arith.addf %26, %30 : vector<63x32xf32>
      %c18 = arith.constant 18 : index
      %c0_28 = arith.constant 0 : index
      %32 = vector.load %arg8[%c18, %c0_28] : memref<81x96xbf16, #tpu.memory_space<vmem>>, vector<63x96xbf16>
      %c2_29 = arith.constant 2 : index
      %c0_30 = arith.constant 0 : index
      %c0_31 = arith.constant 0 : index
      %33 = vector.load %arg3[%c2_29, %c0_30, %c0_31] : memref<3x96x32xbf16, #tpu.memory_space<vmem>>, vector<1x96x32xbf16>
      %34 = vector.shape_cast %33 : vector<1x96x32xbf16> to vector<96x32xbf16>
      %cst_32 = arith.constant dense<0.000000e+00> : vector<63x32xf32>
      %35 = tpu.matmul %32, %34, %cst_32 {dimension_numbers = #tpu.dot_dimension_numbers<[1], [0], [0], [1], [0, 0, 1, 1], [], []>} : vector<63x96xbf16>, vector<96x32xbf16>, vector<63x32xf32> -> vector<63x32xf32>
      %36 = arith.addf %31, %35 : vector<63x32xf32>
      %37 = vector.broadcast %22 : vector<1x32xf32> to vector<63x32xf32>
      %38 = arith.addf %36, %37 : vector<63x32xf32>
      %cst_33 = arith.constant 0.000000e+00 : f32
      %39 = vector.broadcast %cst_33 : f32 to vector<63x32xf32>
      %40 = arith.maximumf %38, %39 : vector<63x32xf32>
      %41 = arith.truncf %40 : vector<63x32xf32> to vector<63x32xbf16>
      %c0_34 = arith.constant 0 : index
      %c0_35 = arith.constant 0 : index
      %42 = vector.load %arg9[%c0_34, %c0_35] : memref<63x96xbf16, #tpu.memory_space<vmem>>, vector<63x32xbf16>
      tpu.vector_store %arg9[%c0_34, %c0_35], %41 {strides = array<i32>} : memref<63x96xbf16, #tpu.memory_space<vmem>>, vector<63x32xbf16>,
      %c1_36 = arith.constant 1 : index
      %c0_37 = arith.constant 0 : index
      %43 = vector.load %arg9[%c1_36, %c0_37] : memref<63x96xbf16, #tpu.memory_space<vmem>>, vector<62x32xbf16>
      %c0_38 = arith.constant 0 : index
      %c32_39 = arith.constant 32 : index
      %44 = vector.load %arg9[%c0_38, %c32_39] : memref<63x96xbf16, #tpu.memory_space<vmem>>, vector<62x32xbf16>
      tpu.vector_store %arg9[%c0_38, %c32_39], %43 {strides = array<i32>} : memref<63x96xbf16, #tpu.memory_space<vmem>>, vector<62x32xbf16>,
      %c2_40 = arith.constant 2 : index
      %c0_41 = arith.constant 0 : index
      %45 = vector.load %arg9[%c2_40, %c0_41] : memref<63x96xbf16, #tpu.memory_space<vmem>>, vector<61x32xbf16>
      %c0_42 = arith.constant 0 : index
      %c64_43 = arith.constant 64 : index
      %46 = vector.load %arg9[%c0_42, %c64_43] : memref<63x96xbf16, #tpu.memory_space<vmem>>, vector<61x32xbf16>
      tpu.vector_store %arg9[%c0_42, %c64_43], %45 {strides = array<i32>} : memref<63x96xbf16, #tpu.memory_space<vmem>>, vector<61x32xbf16>,
      %47 = vector.extract_strided_slice %4 {offsets = [2, 0], sizes = [1, 32], strides = [1, 1]} : vector<4x32xf32> to vector<1x32xf32>
      %c0_44 = arith.constant 0 : index
      %c0_45 = arith.constant 0 : index
      %48 = vector.load %arg9[%c0_44, %c0_45] : memref<63x96xbf16, #tpu.memory_space<vmem>>, vector<45x96xbf16>
      %c0_46 = arith.constant 0 : index
      %c0_47 = arith.constant 0 : index
      %c0_48 = arith.constant 0 : index
      %49 = vector.load %arg4[%c0_46, %c0_47, %c0_48] : memref<3x96x32xbf16, #tpu.memory_space<vmem>>, vector<1x96x32xbf16>
      %50 = vector.shape_cast %49 : vector<1x96x32xbf16> to vector<96x32xbf16>
      %cst_49 = arith.constant dense<0.000000e+00> : vector<45x32xf32>
      %51 = tpu.matmul %48, %50, %cst_49 {dimension_numbers = #tpu.dot_dimension_numbers<[1], [0], [0], [1], [0, 0, 1, 1], [], []>} : vector<45x96xbf16>, vector<96x32xbf16>, vector<45x32xf32> -> vector<45x32xf32>
      %c9_50 = arith.constant 9 : index
      %c0_51 = arith.constant 0 : index
      %52 = vector.load %arg9[%c9_50, %c0_51] : memref<63x96xbf16, #tpu.memory_space<vmem>>, vector<45x96xbf16>
      %c1_52 = arith.constant 1 : index
      %c0_53 = arith.constant 0 : index
      %c0_54 = arith.constant 0 : index
      %53 = vector.load %arg4[%c1_52, %c0_53, %c0_54] : memref<3x96x32xbf16, #tpu.memory_space<vmem>>, vector<1x96x32xbf16>
      %54 = vector.shape_cast %53 : vector<1x96x32xbf16> to vector<96x32xbf16>
      %cst_55 = arith.constant dense<0.000000e+00> : vector<45x32xf32>
      %55 = tpu.matmul %52, %54, %cst_55 {dimension_numbers = #tpu.dot_dimension_numbers<[1], [0], [0], [1], [0, 0, 1, 1], [], []>} : vector<45x96xbf16>, vector<96x32xbf16>, vector<45x32xf32> -> vector<45x32xf32>
      %56 = arith.addf %51, %55 : vector<45x32xf32>
      %c18_56 = arith.constant 18 : index
      %c0_57 = arith.constant 0 : index
      %57 = vector.load %arg9[%c18_56, %c0_57] : memref<63x96xbf16, #tpu.memory_space<vmem>>, vector<45x96xbf16>
      %c2_58 = arith.constant 2 : index
      %c0_59 = arith.constant 0 : index
      %c0_60 = arith.constant 0 : index
      %58 = vector.load %arg4[%c2_58, %c0_59, %c0_60] : memref<3x96x32xbf16, #tpu.memory_space<vmem>>, vector<1x96x32xbf16>
      %59 = vector.shape_cast %58 : vector<1x96x32xbf16> to vector<96x32xbf16>
      %cst_61 = arith.constant dense<0.000000e+00> : vector<45x32xf32>
      %60 = tpu.matmul %57, %59, %cst_61 {dimension_numbers = #tpu.dot_dimension_numbers<[1], [0], [0], [1], [0, 0, 1, 1], [], []>} : vector<45x96xbf16>, vector<96x32xbf16>, vector<45x32xf32> -> vector<45x32xf32>
      %61 = arith.addf %56, %60 : vector<45x32xf32>
      %62 = vector.broadcast %47 : vector<1x32xf32> to vector<45x32xf32>
      %63 = arith.addf %61, %62 : vector<45x32xf32>
      %cst_62 = arith.constant 0.000000e+00 : f32
      %64 = vector.broadcast %cst_62 : f32 to vector<45x32xf32>
      %65 = arith.maximumf %63, %64 : vector<45x32xf32>
      %66 = arith.truncf %65 : vector<45x32xf32> to vector<45x32xbf16>
      %c0_63 = arith.constant 0 : index
      %c0_64 = arith.constant 0 : index
      %67 = vector.load %arg10[%c0_63, %c0_64] : memref<45x96xbf16, #tpu.memory_space<vmem>>, vector<45x32xbf16>
      tpu.vector_store %arg10[%c0_63, %c0_64], %66 {strides = array<i32>} : memref<45x96xbf16, #tpu.memory_space<vmem>>, vector<45x32xbf16>,
      %c1_65 = arith.constant 1 : index
      %c0_66 = arith.constant 0 : index
      %68 = vector.load %arg10[%c1_65, %c0_66] : memref<45x96xbf16, #tpu.memory_space<vmem>>, vector<44x32xbf16>
      %c0_67 = arith.constant 0 : index
      %c32_68 = arith.constant 32 : index
      %69 = vector.load %arg10[%c0_67, %c32_68] : memref<45x96xbf16, #tpu.memory_space<vmem>>, vector<44x32xbf16>
      tpu.vector_store %arg10[%c0_67, %c32_68], %68 {strides = array<i32>} : memref<45x96xbf16, #tpu.memory_space<vmem>>, vector<44x32xbf16>,
      %c2_69 = arith.constant 2 : index
      %c0_70 = arith.constant 0 : index
      %70 = vector.load %arg10[%c2_69, %c0_70] : memref<45x96xbf16, #tpu.memory_space<vmem>>, vector<43x32xbf16>
      %c0_71 = arith.constant 0 : index
      %c64_72 = arith.constant 64 : index
      %71 = vector.load %arg10[%c0_71, %c64_72] : memref<45x96xbf16, #tpu.memory_space<vmem>>, vector<43x32xbf16>
      tpu.vector_store %arg10[%c0_71, %c64_72], %70 {strides = array<i32>} : memref<45x96xbf16, #tpu.memory_space<vmem>>, vector<43x32xbf16>,
      %72 = vector.extract_strided_slice %4 {offsets = [3, 0], sizes = [1, 32], strides = [1, 1]} : vector<4x32xf32> to vector<1x32xf32>
      %c0_73 = arith.constant 0 : index
      %c0_74 = arith.constant 0 : index
      %73 = vector.load %arg10[%c0_73, %c0_74] : memref<45x96xbf16, #tpu.memory_space<vmem>>, vector<27x96xbf16>
      %c0_75 = arith.constant 0 : index
      %c0_76 = arith.constant 0 : index
      %c0_77 = arith.constant 0 : index
      %74 = vector.load %arg5[%c0_75, %c0_76, %c0_77] : memref<3x96x32xbf16, #tpu.memory_space<vmem>>, vector<1x96x32xbf16>
      %75 = vector.shape_cast %74 : vector<1x96x32xbf16> to vector<96x32xbf16>
      %cst_78 = arith.constant dense<0.000000e+00> : vector<27x32xf32>
      %76 = tpu.matmul %73, %75, %cst_78 {dimension_numbers = #tpu.dot_dimension_numbers<[1], [0], [0], [1], [0, 0, 1, 1], [], []>} : vector<27x96xbf16>, vector<96x32xbf16>, vector<27x32xf32> -> vector<27x32xf32>
      %c9_79 = arith.constant 9 : index
      %c0_80 = arith.constant 0 : index
      %77 = vector.load %arg10[%c9_79, %c0_80] : memref<45x96xbf16, #tpu.memory_space<vmem>>, vector<27x96xbf16>
      %c1_81 = arith.constant 1 : index
      %c0_82 = arith.constant 0 : index
      %c0_83 = arith.constant 0 : index
      %78 = vector.load %arg5[%c1_81, %c0_82, %c0_83] : memref<3x96x32xbf16, #tpu.memory_space<vmem>>, vector<1x96x32xbf16>
      %79 = vector.shape_cast %78 : vector<1x96x32xbf16> to vector<96x32xbf16>
      %cst_84 = arith.constant dense<0.000000e+00> : vector<27x32xf32>
      %80 = tpu.matmul %77, %79, %cst_84 {dimension_numbers = #tpu.dot_dimension_numbers<[1], [0], [0], [1], [0, 0, 1, 1], [], []>} : vector<27x96xbf16>, vector<96x32xbf16>, vector<27x32xf32> -> vector<27x32xf32>
      %81 = arith.addf %76, %80 : vector<27x32xf32>
      %c18_85 = arith.constant 18 : index
      %c0_86 = arith.constant 0 : index
      %82 = vector.load %arg10[%c18_85, %c0_86] : memref<45x96xbf16, #tpu.memory_space<vmem>>, vector<27x96xbf16>
      %c2_87 = arith.constant 2 : index
      %c0_88 = arith.constant 0 : index
      %c0_89 = arith.constant 0 : index
      %83 = vector.load %arg5[%c2_87, %c0_88, %c0_89] : memref<3x96x32xbf16, #tpu.memory_space<vmem>>, vector<1x96x32xbf16>
      %84 = vector.shape_cast %83 : vector<1x96x32xbf16> to vector<96x32xbf16>
      %cst_90 = arith.constant dense<0.000000e+00> : vector<27x32xf32>
      %85 = tpu.matmul %82, %84, %cst_90 {dimension_numbers = #tpu.dot_dimension_numbers<[1], [0], [0], [1], [0, 0, 1, 1], [], []>} : vector<27x96xbf16>, vector<96x32xbf16>, vector<27x32xf32> -> vector<27x32xf32>
      %86 = arith.addf %81, %85 : vector<27x32xf32>
      %87 = vector.broadcast %72 : vector<1x32xf32> to vector<27x32xf32>
      %88 = arith.addf %86, %87 : vector<27x32xf32>
      %cst_91 = arith.constant 0.000000e+00 : f32
      %89 = vector.broadcast %cst_91 : f32 to vector<27x32xf32>
      %90 = arith.maximumf %88, %89 : vector<27x32xf32>
      %91 = arith.index_cast %arg11 : i32 to index
      %c0_92 = arith.constant 0 : index
      %c0_93 = arith.constant 0 : index
      %92 = vector.load %arg7[%91, %c0_92, %c0_93] : memref<2x27x32xf32, #tpu.memory_space<vmem>>, vector<1x27x32xf32>
      %93 = vector.shape_cast %92 : vector<1x27x32xf32> to vector<27x32xf32>
      %94 = vector.shape_cast %90 : vector<27x32xf32> to vector<1x27x32xf32>
      tpu.vector_store %arg7[%91, %c0_92, %c0_93], %94 {strides = array<i32>} : memref<2x27x32xf32, #tpu.memory_space<vmem>>, vector<1x27x32xf32>,
    }
    %c2_i32_4 = arith.constant 2 : i32
    return
  }
  func.func @transform_0(%arg0: i32) -> (i32, i32, i32) {
    %c0_i32 = arith.constant 0 : i32
    %c0_i32_0 = arith.constant 0 : i32
    %c0_i32_1 = arith.constant 0 : i32
    return %arg0, %c0_i32, %c0_i32_0 : i32, i32, i32
  }
  func.func @transform_1(%arg0: i32) -> (i32, i32) {
    %c0_i32 = arith.constant 0 : i32
    %c0_i32_0 = arith.constant 0 : i32
    %c0_i32_1 = arith.constant 0 : i32
    return %c0_i32, %c0_i32_0 : i32, i32
  }
  func.func @transform_2(%arg0: i32) -> (i32, i32, i32) {
    %c0_i32 = arith.constant 0 : i32
    %c0_i32_0 = arith.constant 0 : i32
    %c0_i32_1 = arith.constant 0 : i32
    %c0_i32_2 = arith.constant 0 : i32
    return %c0_i32, %c0_i32_0, %c0_i32_1 : i32, i32, i32
  }
  func.func @transform_3(%arg0: i32) -> (i32, i32, i32) {
    %c0_i32 = arith.constant 0 : i32
    %c0_i32_0 = arith.constant 0 : i32
    %c0_i32_1 = arith.constant 0 : i32
    %c0_i32_2 = arith.constant 0 : i32
    return %c0_i32, %c0_i32_0, %c0_i32_1 : i32, i32, i32
  }
  func.func @transform_4(%arg0: i32) -> (i32, i32, i32) {
    %c0_i32 = arith.constant 0 : i32
    %c0_i32_0 = arith.constant 0 : i32
    %c0_i32_1 = arith.constant 0 : i32
    %c0_i32_2 = arith.constant 0 : i32
    return %c0_i32, %c0_i32_0, %c0_i32_1 : i32, i32, i32
  }
  func.func @transform_5(%arg0: i32) -> (i32, i32) {
    %c0_i32 = arith.constant 0 : i32
    %c0_i32_0 = arith.constant 0 : i32
    %c0_i32_1 = arith.constant 0 : i32
    return %c0_i32, %c0_i32_0 : i32, i32
  }
  func.func @transform_6(%arg0: i32) -> (i32, i32, i32) {
    %c0_i32 = arith.constant 0 : i32
    %c0_i32_0 = arith.constant 0 : i32
    %c0_i32_1 = arith.constant 0 : i32
    return %arg0, %c0_i32, %c0_i32_0 : i32, i32, i32
  }
}

</mosaic_0001>

<bundles_post_ra>
// kernel: encoder_forward.1
= control target key start
LH: loop header
LB: loop body
LE: loop exit
PB: predicated region body
PF: predicated region fallthrough
CT: control target
= control target key end

     0   :  { %s2876_s21 = smov 0   ;;  %s3402_s0 = inlined_call_operand.vmem [shape: bf16[4,81,96], index: 0, kind: input, shape index: {}]   ;;  %s3403_s1 = inlined_call_operand.vmem [shape: bf16[96,32], index: 1, kind: input, shape index: {}]   ;;  %s3404_s2 = inlined_call_operand.vmem [shape: bf16[3,96,32], index: 2, kind: input, shape index: {}]   ;;  %s3405_s3 = inlined_call_operand.vmem [shape: bf16[3,96,32], index: 3, kind: input, shape index: {}]   ;;  %s3406_s4 = inlined_call_operand.vmem [shape: bf16[3,96,32], index: 4, kind: input, shape index: {}]   ;;  %s3407_s5 = inlined_call_operand.vmem [shape: f32[4,32], index: 5, kind: input, shape index: {}]   ;;  %s3408_s6 = inlined_call_operand.vmem [shape: f32[4,27,32], index: 6, kind: output, shape index: {}]  }
   0x1 LB: > { %s2227_s22 = sadd.s32 4294967295, %s2833_s21   ;;  %p2231_p0 = scmp.ge.s32.totalorder %s2833_s21, 1  ;;  %s2833_s21 = sphi %s2876_s21, %s16_s21  }
   0x2   : > { %p214_p1 = scmp.lt.s32.totalorder %s2833_s21, 3 }
   0x4   : > { %p215_p2 = pnand %p2231_p0, %p214_p1 }
   0x5   : > { %s2232_s23 = sshll.u32 (!%p215_p2), %s2227_s22, 1  ;;  %s2900_s10 = smov (!%p215_p2), 0  }
   0x6   : > { %218 = sbr.rel (%p215_p2) target bundleno = 1559 (0x617), region = 44  ;;  %p247_p3 = scmp.lt.s32.totalorder (!%p215_p2), %s2232_s23, 3 }
   0xb   : > { %vm261_vm0 = vcmask 781315   ;;  %vm262_vm1 = vsmask.f32 7950  ;;  %v264_v0 = vld [vmem:[#allocation2 + $0x24] sm:$0x8]  ;;  %vm267_vm3 = vcmask 778240  }
   0xc   : > { %vm263_vm2 = vmand %vm261_vm0, %vm262_vm1  ;;  %vm268_vm4 = vsmask.f32 256  ;;  %v270_v1 = vld [vmem:[#allocation2 + $0x28] sm:$0x1]  ;;  %vm273_vm6 = vcmask 781314   ;;  %s3414_s23 = smov (!%p247_p3, %s2232_s23), 3 }
   0xd   : > { %v265_v2 = vsel %vm263_vm2, 0, %v264_v0  ;;  %vm269_vm5 = vmand %vm267_vm3, %vm268_vm4  ;;  %vm274_vm7 = vsmask.f32 3338  ;;  %v276_v3 = vld [vmem:[#allocation3 + $0x1c] sm:$0xc]  ;;  %vm279_vm9 = vcmask 780289  }
   0xe   : > { %266 = vst [vmem:[#allocation2 + $0x24] sm:$0x8] %v265_v2  ;;  %v271_v4 = vsel %vm269_vm5, 0, %v270_v1  ;;  %vm275_vm8 = vmand %vm273_vm6, %vm274_vm7  ;;  %vm280_vm10 = vsmask.f32 2310  ;;  %s2804_s24 = smul.u32 44, %s3414_s23 }
   0xf   : > { %272 = vst [vmem:[#allocation2 + $0x28] sm:$0x1] %v271_v4  ;;  %v277_v5 = vsel %vm275_vm8, 0, %v276_v3  ;;  %s2653_s25 = sshll.u32 %s3414_s23, 5  ;;  %vm281_vm11 = vmand %vm279_vm9, %vm280_vm10  ;;  %v282_v6 = vld [vmem:[#allocation4 + $0x14] sm:$0x6] }
  0x10   : > { %278 = vst [vmem:[#allocation3 + $0x1c] sm:$0xc] %v277_v5  ;;  %s2888_s28 = scalar_lea.vmem %s3408_s6, %s2653_s25  ;;  %v283_v7 = vsel %vm281_vm11, 0, %v282_v6  ;;  %v2893_v8 = vld [vmem:[%s3407_s5] sm:$0xf]  ;;  %s2898_s9 = scalar_lea.vmem %s3402_s0, %s2804_s24 }
  0x11   : > { %284 = vst [vmem:[#allocation4 + $0x14] sm:$0x6] %v283_v7 }
  0x12 LB: >> { %v2665_v9 = vld [vmem:[%s3403_s1 + $0x28] sm:$0xff]  ;;  %v2664_v10 = vld [vmem:[%s3403_s1 + $0x20] sm:$0xff]  ;;  %v2663_v11 = vld [vmem:[%s3403_s1 + $0x18] sm:$0xff]  ;;  %s2654_s22 = smul.u32 44, %s2837_s10  ;;  %vm383_vm12 = vcmask 785408   ;;  %v2932_v23 = vperm.slane %v2893_v8, 0  ;;  %s2837_s10 = sphi %s2900_s10, %s291_s10  }
  0x13   : >> { %404 = vmatpush.bf16.msra.mxu0 %v2665_v9  ;;  %v2662_v12 = vld [vmem:[%s3403_s1 + $0x10] sm:$0xff]  ;;  %v2661_v13 = vld [vmem:[%s3403_s1 + $0x8] sm:$0xff]  ;;  %v2660_v14 = vld [vmem:[%s3403_s1] sm:$0xff]  ;;  %vm462_vm13 = vcmask 257024   ;;  %vm489_vm14 = vsmask.f32 3328 }
  0x14   : >> { %s294_s25 = scalar_lea.vmem %s2898_s9, %s2654_s22  ;;  %vm490_vm15 = vsmask.f32 7440  ;;  %s2839_s26 = smov 32   ;;  %vm473_vm1 = vcmask 253952   ;;  %vm626_vm3 = vcmask 519424   ;;  %vm659_vm5 = vcmask 1042432  }
  0x15   : >> { %v2655_v15 = vld [vmem:[%s294_s25] sm:$0xff]  ;;  %v2656_v16 = vld [vmem:[%s294_s25 + $0x8] sm:$0xff]  ;;  %v2657_v17 = vld [vmem:[%s294_s25 + $0x10] sm:$0xff]  ;;  %vm660_vm6 = vcmask 1046532   ;;  %s2840_s27 = smov 64   ;;  %vm723_vm8 = vcmask 781824  }
  0x16   : >> { %v2658_v18 = vld [vmem:[%s294_s25 + $0x18] sm:$0xff]  ;;  %v2659_v19 = vld [vmem:[%s294_s25 + $0x20] sm:$0xff]  ;;  %v305_v20 = vld [vmem:[%s294_s25 + $0x28] sm:$0x1]  ;;  %vm1029_vm9 = vcmask 1046528  }
  0x17   : >> { %405 = vmatpush.bf16.msra.mxu0 %v2664_v10  ;;  %v340_v21 = vunpack.c.l.b16 %v305_v20  ;;  %vm2944_vm0 = vmor %vm489_vm14, %vm490_vm15  ;;  %vm792_vm10 = vsmask.f32 7424  ;;  %v2722_v55 = vld [vmem:[%s3406_s4 + $0x58] sm:$0xff] }
  0x18   : >> { %vm474_vm2 = vmand %vm473_vm1, %vm268_vm4  ;;  %vm1351_vm1 = vcmask 780800  }
  0x19   : >> { %v346_v22 = vpack.c.b16 %v340_v21, %v340_v21  ;;  %vm2995_vm7 = vmor %vm659_vm5, %vm660_vm6  ;;  %vm1711_vm6 = vcmask 256000  }
  0x1a   : >> { %vm734_vm11 = vmand %vm723_vm8, %vm489_vm14 }
  0x1b   : >> { %406 = vmatpush.bf16.msra.mxu0 %v2663_v11  ;;  %vm1157_vm15 = vmand %vm462_vm13, %vm489_vm14  ;;  %vm1279_vm14 = vcmask 518400  }
  0x1f   : >> { %407 = vmatpush.bf16.msra.mxu0 %v2662_v12 }
  0x23   : >> { %408 = vmatpush.bf16.msra.mxu0 %v2661_v13 }
  0x27   : >> { %409 = vmatpush.bf16.msra.mxu0 %v2660_v14 }
  0x2a   : >> { %2282 = vmatmul.msk.bf16.vlgmr.msra.gmra.mxu0 %vm383_vm12, %v2655_v15 }
  0x2b   : >> { %1964 = vmatpush.bf16.msrb.mxu0 %v2722_v55 }
  0x3a   : >> { %2283 = vmatmul.msk.bf16.gmra.mxu0 %vm383_vm12, %v2656_v16 }
  0x4a   : >> { %2284 = vmatmul.msk.bf16.gmra.mxu0 %vm383_vm12, %v2657_v17 }
  0x5a   : >> { %2285 = vmatmul.msk.bf16.gmra.mxu0 %vm383_vm12, %v2658_v18 }
  0x6a   : >> { %2286 = vmatmul.msk.bf16.gmra.mxu0 %vm383_vm12, %v2659_v19 }
  0x7a   : >> { %2287 = vmatmul.msk.bf16.gmra.mxu0 %vm383_vm12, %v346_v22 }
  0xa7   : >> { %v411_v24 = vpop.f32.mrf.mxu0 }
  0xa8   : >> { %v412_v25 = vadd.f32 %v411_v24, %v2932_v23 }
  0xaa   : >> { %v440_v26 = vmax.f32 %v412_v25, 0.0 }
  0xac   : >> { %v451_v27 = vpack.c.bf16 %v440_v26, %v440_v26 }
  0xae   : >> { %463 = vst.msk [vmem:[#allocation2] sm:$0xf] %vm462_vm13, %v451_v27 }
  0xaf   : >> { %v413_v28 = vpop.f32.mrf.mxu0 }
  0xb0   : >> { %v414_v29 = vadd.f32 %v413_v28, %v2932_v23 }
  0xb2   : >> { %v441_v30 = vmax.f32 %v414_v29, 0.0 }
  0xb4   : >> { %v452_v31 = vpack.c.bf16 %v441_v30, %v441_v30 }
  0xb5   : >> { %v478_v54 = vld [vmem:[#allocation2] sm:$0xf] }
  0xb6   : >> { %464 = vst.msk [vmem:[#allocation2 + $0x4] sm:$0xf] %vm462_vm13, %v452_v31  ;;  %v493_v58 = vshrl.u32 %v478_v54, 16  ;;  %v496_v59 = vshll.u32 %v478_v54, 16 }
  0xb7   : >> { %v416_v32 = vpop.f32.mrf.mxu0 }
  0xb8   : >> { %v417_v33 = vadd.f32 %v416_v32, %v2932_v23  ;;  %v495_v2 = vrot.slane %v493_v58, 4  ;;  %v498_v3 = vrot.slane %v496_v59, 5 }
  0xba   : >> { %v442_v34 = vmax.f32 %v417_v33, 0.0  ;;  %v499_v11 = vor.u32 %v498_v3, %v495_v2 }
  0xbc   : >> { %v453_v35 = vpack.c.bf16 %v442_v34, %v442_v34  ;;  %v500_v18 = vrot.slane %v499_v11, 4 }
  0xbd   : >> { %v479_v36 = vld [vmem:[#allocation2 + $0x4] sm:$0xf] }
  0xbe   : >> { %465 = vst.msk [vmem:[#allocation2 + $0x8] sm:$0xf] %vm462_vm13, %v453_v35  ;;  %v502_v37 = vshll.u32 %v479_v36, 16  ;;  %v506_v38 = vshrl.u32 %v479_v36, 16 }
  0xbf   : >> { %v418_v39 = vpop.f32.mrf.mxu0 }
  0xc0   : >> { %v419_v40 = vadd.f32 %v418_v39, %v2932_v23  ;;  %v504_v41 = vrot.slane %v502_v37, 5  ;;  %v508_v42 = vrot.slane %v506_v38, 4 }
  0xc2   : >> { %v443_v43 = vmax.f32 %v419_v40, 0.0  ;;  %v509_v45 = vor.u32 %v508_v42, %v504_v41  ;;  %v505_v26 = vsel %vm2944_vm0, %v500_v18, %v504_v41 }
  0xc4   : >> { %v454_v44 = vpack.c.bf16 %v443_v43, %v443_v43  ;;  %v510_v51 = vrot.slane %v509_v45, 4 }
  0xc5   : >> { %v480_v46 = vld [vmem:[#allocation2 + $0x8] sm:$0xf] }
  0xc6   : >> { %466 = vst.msk [vmem:[#allocation2 + $0xc] sm:$0xf] %vm462_vm13, %v454_v44  ;;  %v512_v47 = vshll.u32 %v480_v46, 16  ;;  %v516_v48 = vshrl.u32 %v480_v46, 16 }
  0xc7   : >> { %v421_v49 = vpop.f32.mrf.mxu0 }
  0xc8   : >> { %v422_v50 = vadd.f32 %v421_v49, %v2932_v23  ;;  %v514_v52 = vrot.slane %v512_v47, 5  ;;  %v518_v53 = vrot.slane %v516_v48, 4 }
  0xca   : >> { %v444_v56 = vmax.f32 %v422_v50, 0.0  ;;  %v515_v57 = vsel %vm2944_vm0, %v510_v51, %v514_v52  ;;  %v519_v61 = vor.u32 %v518_v53, %v514_v52 }
  0xcb   : >> { %598 = vrot.lane.b32.xlu0 %v515_v57, %s2839_s26 }
  0xcc   : >> { %v455_v60 = vpack.c.bf16 %v444_v56, %v444_v56  ;;  %v520_v5 = vrot.slane %v519_v61, 4 }
  0xcd   : >> { %v481_v62 = vld [vmem:[#allocation2 + $0xc] sm:$0xf] }
  0xce   : >> { %467 = vst.msk [vmem:[#allocation2 + $0x10] sm:$0xf] %vm462_vm13, %v455_v60  ;;  %v522_v63 = vshll.u32 %v481_v62, 16  ;;  %v526_v0 = vshrl.u32 %v481_v62, 16 }
  0xcf   : >> { %v423_v1 = vpop.f32.mrf.mxu0 }
  0xd0   : >> { %v424_v4 = vadd.f32 %v423_v1, %v2932_v23  ;;  %v524_v6 = vrot.slane %v522_v63, 5  ;;  %v528_v7 = vrot.slane %v526_v0, 4 }
  0xd2   : >> { %v445_v9 = vmax.f32 %v424_v4, 0.0  ;;  %v525_v10 = vsel %vm2944_vm0, %v520_v5, %v524_v6  ;;  %v529_v13 = vor.u32 %v528_v7, %v524_v6 }
  0xd3   : >> { %600 = vrot.lane.b32.xlu0 %v525_v10, %s2839_s26 }
  0xd4   : >> { %v456_v12 = vpack.c.bf16 %v445_v9, %v445_v9  ;;  %v530_v20 = vrot.slane %v529_v13, 4  ;;  %v475_v13 = vld [vmem:[#allocation2 + $0x28] sm:$0x1] }
  0xd5   : >> { %v482_v14 = vld [vmem:[#allocation2 + $0x10] sm:$0xf] }
  0xd6   : >> { %468 = vst.msk [vmem:[#allocation2 + $0x14] sm:$0xf] %vm462_vm13, %v456_v12  ;;  %v532_v15 = vshll.u32 %v482_v14, 16  ;;  %v536_v16 = vshrl.u32 %v482_v14, 16 }
  0xd7   : >> { %v426_v17 = vpop.f32.mrf.mxu0 }
  0xd8   : >> { %v427_v19 = vadd.f32 %v426_v17, %v2932_v23  ;;  %v534_v21 = vrot.slane %v532_v15, 5  ;;  %v538_v22 = vrot.slane %v536_v16, 4 }
  0xda   : >> { %v446_v24 = vmax.f32 %v427_v19, 0.0  ;;  %v535_v25 = vsel %vm2944_vm0, %v530_v20, %v534_v21  ;;  %v539_v28 = vor.u32 %v538_v22, %v534_v21 }
  0xdb   : >> { %602 = vrot.lane.b32.xlu1 %v535_v25, %s2839_s26  ;;  %596 = vrot.lane.b32.xlu0 %v505_v26, %s2839_s26 }
  0xdc   : >> { %v457_v27 = vpack.c.bf16 %v446_v24, %v446_v24  ;;  %v540_v34 = vrot.slane %v539_v28, 4 }
  0xdd   : >> { %v483_v29 = vld [vmem:[#allocation2 + $0x14] sm:$0xf] }
  0xde   : >> { %469 = vst.msk [vmem:[#allocation2 + $0x18] sm:$0xf] %vm462_vm13, %v457_v27  ;;  %v542_v30 = vshll.u32 %v483_v29, 16  ;;  %v546_v31 = vshrl.u32 %v483_v29, 16 }
  0xdf   : >> { %v428_v32 = vpop.f32.mrf.mxu0 }
  0xe0   : >> { %v429_v33 = vadd.f32 %v428_v32, %v2932_v23  ;;  %v544_v35 = vrot.slane %v542_v30, 5  ;;  %v548_v36 = vrot.slane %v546_v31, 4 }
  0xe2   : >> { %v447_v37 = vmax.f32 %v429_v33, 0.0  ;;  %v545_v38 = vsel %vm2944_vm0, %v540_v34, %v544_v35  ;;  %v549_v40 = vor.u32 %v548_v36, %v544_v35 }
  0xe3   : >> { %604 = vrot.lane.b32.xlu1 %v545_v38, %s2839_s26 }
  0xe4   : >> { %v458_v39 = vpack.c.bf16 %v447_v37, %v447_v37  ;;  %v550_v46 = vrot.slane %v549_v40, 4  ;;  %v2714_v40 = vld [vmem:[%s3406_s4 + $0x20] sm:$0xff] }
  0xe5   : >> { %v484_v41 = vld [vmem:[#allocation2 + $0x18] sm:$0xf] }
  0xe6   : >> { %470 = vst.msk [vmem:[#allocation2 + $0x1c] sm:$0xf] %vm462_vm13, %v458_v39  ;;  %v552_v42 = vshll.u32 %v484_v41, 16  ;;  %v556_v43 = vshrl.u32 %v484_v41, 16 }
  0xe7   : >> { %v431_v44 = vpop.f32.mrf.mxu0 }
  0xe8   : >> { %v432_v45 = vadd.f32 %v431_v44, %v2932_v23  ;;  %v554_v47 = vrot.slane %v552_v42, 5  ;;  %v558_v48 = vrot.slane %v556_v43, 4 }
  0xea   : >> { %v448_v49 = vmax.f32 %v432_v45, 0.0  ;;  %v555_v50 = vsel %vm2944_vm0, %v550_v46, %v554_v47  ;;  %v559_v52 = vor.u32 %v558_v48, %v554_v47 }
  0xeb   : >> { %606 = vrot.lane.b32.xlu2 %v555_v50, %s2839_s26 }
  0xec   : >> { %v459_v51 = vpack.c.bf16 %v448_v49, %v448_v49  ;;  %v560_v59 = vrot.slane %v559_v52, 4 }
  0xed   : >> { %v485_v53 = vld [vmem:[#allocation2 + $0x1c] sm:$0xf] }
  0xee   : >> { %471 = vst.msk [vmem:[#allocation2 + $0x20] sm:$0xf] %vm462_vm13, %v459_v51  ;;  %v562_v54 = vshll.u32 %v485_v53, 16  ;;  %v566_v56 = vshrl.u32 %v485_v53, 16 }
  0xef   : >> { %v433_v57 = vpop.f32.mrf.mxu0 }
  0xf0   : >> { %v434_v58 = vadd.f32 %v433_v57, %v2932_v23  ;;  %v564_v60 = vrot.slane %v562_v54, 5  ;;  %v568_v61 = vrot.slane %v566_v56, 4 }
  0xf2   : >> { %v449_v62 = vmax.f32 %v434_v58, 0.0  ;;  %v565_v63 = vsel %vm2944_vm0, %v560_v59, %v564_v60  ;;  %v569_v1 = vor.u32 %v568_v61, %v564_v60 }
  0xf3   : >> { %608 = vrot.lane.b32.xlu2 %v565_v63, %s2839_s26 }
  0xf4   : >> { %v460_v0 = vpack.c.bf16 %v449_v62, %v449_v62  ;;  %v570_v7 = vrot.slane %v569_v1, 4 }
  0xf5   : >> { %v486_v2 = vld [vmem:[#allocation2 + $0x20] sm:$0xf] }
  0xf6   : >> { %472 = vst.msk [vmem:[#allocation2 + $0x24] sm:$0xf] %vm462_vm13, %v460_v0  ;;  %v572_v3 = vshll.u32 %v486_v2, 16  ;;  %v576_v4 = vshrl.u32 %v486_v2, 16 }
  0xf7   : >> { %v436_v5 = vpop.f32.mrf.mxu0 }
  0xf8   : >> { %v437_v6 = vadd.f32 %v436_v5, %v2932_v23  ;;  %v574_v9 = vrot.slane %v572_v3, 5  ;;  %v578_v10 = vrot.slane %v576_v4, 4 }
  0xfa   : >> { %v450_v11 = vmax.f32 %v437_v6, 0.0  ;;  %v575_v12 = vsel %vm2944_vm0, %v570_v7, %v574_v9  ;;  %v579_v15 = vor.u32 %v578_v10, %v574_v9 }
  0xfb   : >> { %610 = vrot.lane.b32.xlu1 %v575_v12, %s2839_s26 }
  0xfc   : >> { %v461_v14 = vpack.c.bf16 %v450_v11, %v450_v11  ;;  %v580_v20 = vrot.slane %v579_v15, 4 }
  0xfd   : >> { %v487_v16 = vld [vmem:[#allocation2 + $0x24] sm:$0xf] }
  0xfe   : >> { %v476_v17 = vsel %vm474_vm2, %v461_v14, %v475_v13  ;;  %v582_v18 = vshll.u32 %v487_v16, 16  ;;  %v586_v19 = vshrl.u32 %v487_v16, 16  ;;  %vm1352_vm2 = vsmask.f32 2304 }
  0xff   : >> { %477 = vst [vmem:[#allocation2 + $0x28] sm:$0x1] %v476_v17  ;;  %v438_v23 = vpop.f32.mrf.mxu0  ;;  %vm1353_vm5 = vmand %vm1351_vm1, %vm1352_vm2 }
 0x100   : >> { %v584_v21 = vrot.slane %v582_v18, 5  ;;  %v588_v22 = vrot.slane %v586_v19, 4 }
 0x102   : >> { %v585_v24 = vsel %vm2944_vm0, %v580_v20, %v584_v21  ;;  %v589_v25 = vor.u32 %v588_v22, %v584_v21  ;;  %v2687_v20 = vld [vmem:[%s3404_s2 + $0x88] sm:$0xff]  ;;  %v2677_v22 = vld [vmem:[%s3404_s2 + $0x58] sm:$0xff] }
 0x103   : >> { %612 = vrot.lane.b32.xlu2 %v585_v24, %s2839_s26  ;;  %v2671_v21 = vld [vmem:[%s3404_s2 + $0x28] sm:$0xff]  ;;  %1089 = vmatpush.bf16.msra.mxu3 %v2687_v20  ;;  %v2686_v24 = vld [vmem:[%s3404_s2 + $0x80] sm:$0xff] }
 0x104   : >> { %v590_v28 = vrot.slane %v589_v25, 4  ;;  %957 = vmatpush.bf16.msra.mxu2 %v2671_v21  ;;  %v2670_v25 = vld [vmem:[%s3404_s2 + $0x20] sm:$0xff]  ;;  %874 = vmatpush.bf16.msra.mxu1 %v2677_v22 }
 0x106   : >> { %v488_v26 = vld [vmem:[#allocation2 + $0x28] sm:$0x1] }
 0x107   : >> { %v592_v27 = vshll.u32 %v488_v26, 16  ;;  %v647_v14 = vld [vmem:[#allocation2 + $0x28] sm:$0x1]  ;;  %v2676_v26 = vld [vmem:[%s3404_s2 + $0x50] sm:$0xff]  ;;  %1090 = vmatpush.bf16.msra.mxu3 %v2686_v24 }
 0x108   : >> { %v691_v19 = vrot.slane %v647_v14, 5  ;;  %958 = vmatpush.bf16.msra.mxu2 %v2670_v25  ;;  %875 = vmatpush.bf16.msra.mxu1 %v2676_v26 }
 0x109   : >> { %v594_v29 = vrot.slane %v592_v27, 5  ;;  %v2685_v27 = vld [vmem:[%s3404_s2 + $0x78] sm:$0xff] }
 0x10b   : >> { %v595_v30 = vsel %vm2944_vm0, %v590_v28, %v594_v29  ;;  %v2669_v29 = vld [vmem:[%s3404_s2 + $0x18] sm:$0xff]  ;;  %1091 = vmatpush.bf16.msra.mxu3 %v2685_v27  ;;  %v992_v27 = vld [vmem:[#allocation2 + $0x28] sm:$0x1] }
 0x10c   : >> { %614 = vrot.lane.b32.xlu0 %v595_v30, %s2839_s26  ;;  %v2675_v30 = vld [vmem:[%s3404_s2 + $0x48] sm:$0xff]  ;;  %959 = vmatpush.bf16.msra.mxu2 %v2669_v29 }
 0x10d   : >> { %876 = vmatpush.bf16.msra.mxu1 %v2675_v30 }
 0x13d   : >> { %v599_v31 = vpop.permute.xlu0 %598 }
 0x13e   : >> { %628 = vst.msk [vmem:[#allocation2 + $0x4] sm:$0xf] %vm626_vm3, %v599_v31  ;;  %v2684_v31 = vld [vmem:[%s3404_s2 + $0x70] sm:$0xff] }
 0x13f   : >> { %1092 = vmatpush.bf16.msra.mxu3 %v2684_v31 }
 0x145   : >> { %v607_v32 = vpop.permute.xlu2 %606  ;;  %v601_v33 = vpop.permute.xlu0 %600  ;;  %v638_v34 = vld [vmem:[#allocation2 + $0x4] sm:$0xf] }
 0x146   : >> { %632 = vst.msk [vmem:[#allocation2 + $0x14] sm:$0xf] %vm626_vm3, %v607_v32  ;;  %v664_v35 = vrot.slane %v638_v34, 5  ;;  %v2668_v32 = vld [vmem:[%s3404_s2 + $0x10] sm:$0xff]  ;;  %v2683_v34 = vld [vmem:[%s3404_s2 + $0x68] sm:$0xff] }
 0x147   : >> { %629 = vst.msk [vmem:[#allocation2 + $0x8] sm:$0xf] %vm626_vm3, %v601_v33  ;;  %v2674_v33 = vld [vmem:[%s3404_s2 + $0x40] sm:$0xff]  ;;  %960 = vmatpush.bf16.msra.mxu2 %v2668_v32  ;;  %1093 = vmatpush.bf16.msra.mxu3 %v2683_v34 }
 0x148   : >> { %v666_v41 = vrot.slane %v664_v35, 4  ;;  %877 = vmatpush.bf16.msra.mxu1 %v2674_v33 }
 0x14d   : >> { %v609_v36 = vpop.permute.xlu2 %608  ;;  %v603_v37 = vpop.permute.xlu1 %602  ;;  %v642_v48 = vld [vmem:[#allocation2 + $0x14] sm:$0xf] }
 0x14e   : >> { %633 = vst.msk [vmem:[#allocation2 + $0x18] sm:$0xf] %vm626_vm3, %v609_v36  ;;  %v597_v38 = vpop.permute.xlu0 %596  ;;  %v639_v39 = vld [vmem:[#allocation2 + $0x8] sm:$0xf]  ;;  %v676_v51 = vrot.slane %v642_v48, 5 }
 0x14f   : >> { %630 = vst.msk [vmem:[#allocation2 + $0xc] sm:$0xf] %vm626_vm3, %v603_v37  ;;  %v667_v42 = vrot.slane %v639_v39, 5  ;;  %v2667_v36 = vld [vmem:[%s3404_s2 + $0x8] sm:$0xff]  ;;  %v2673_v37 = vld [vmem:[%s3404_s2 + $0x38] sm:$0xff]  ;;  %v2666_v39 = vld [vmem:[%s3404_s2] sm:$0xff] }
 0x150   : >> { %627 = vst.msk [vmem:[#allocation2] sm:$0xf] %vm626_vm3, %v597_v38  ;;  %v678_v58 = vrot.slane %v676_v51, 4  ;;  %v2682_v38 = vld [vmem:[%s3404_s2 + $0x60] sm:$0xff]  ;;  %961 = vmatpush.bf16.msra.mxu2 %v2667_v36  ;;  %878 = vmatpush.bf16.msra.mxu1 %v2673_v37 }
 0x151   : >> { %v668_v43 = vsel %vm2995_vm7, %v666_v41, %v667_v42  ;;  %v669_v46 = vrot.slane %v667_v42, 4  ;;  %v2672_v41 = vld [vmem:[%s3404_s2 + $0x30] sm:$0xff]  ;;  %1094 = vmatpush.bf16.msra.mxu3 %v2682_v38 }
 0x152   : >> { %695 = vrot.lane.b32.xlu1 %v668_v43, %s2840_s27 }
 0x154   : >> { %962 = vmatpush.bf16.msra.mxu2 %v2666_v39  ;;  %879 = vmatpush.bf16.msra.mxu1 %v2672_v41  ;;  %v3120_v39 = vperm.slane %v2893_v8, 1 }
 0x155   : >> { %v605_v44 = vpop.permute.xlu1 %604  ;;  %v643_v50 = vld [vmem:[#allocation2 + $0x18] sm:$0xf] }
 0x156   : >> { %631 = vst.msk [vmem:[#allocation2 + $0x10] sm:$0xf] %vm626_vm3, %v605_v44  ;;  %v640_v45 = vld [vmem:[#allocation2 + $0xc] sm:$0xf]  ;;  %v679_v53 = vrot.slane %v643_v50, 5 }
 0x157   : >> { %v670_v47 = vrot.slane %v640_v45, 5  ;;  %v637_v62 = vld [vmem:[#allocation2] sm:$0xe] }
 0x158   : >> { %v680_v61 = vsel %vm2995_vm7, %v678_v58, %v679_v53  ;;  %v2288_v0 = vrot.slane %v637_v62, 9  ;;  %v681_v5 = vrot.slane %v679_v53, 4 }
 0x159   : >> { %v671_v49 = vsel %vm2995_vm7, %v669_v46, %v670_v47  ;;  %v672_v56 = vrot.slane %v670_v47, 4 }
 0x15a   : >> { %697 = vrot.lane.b32.xlu2 %v671_v49, %s2840_s27  ;;  %v665_v1 = vsel %vm2995_vm7, %v2288_v0, %v664_v35 }
 0x15d   : >> { %v613_v52 = vpop.permute.xlu2 %612  ;;  %v641_v54 = vld [vmem:[#allocation2 + $0x10] sm:$0xf] }
 0x15e   : >> { %635 = vst.msk [vmem:[#allocation2 + $0x20] sm:$0xf] %vm626_vm3, %v613_v52  ;;  %v673_v57 = vrot.slane %v641_v54, 5 }
 0x160   : >> { %v674_v59 = vsel %vm2995_vm7, %v672_v56, %v673_v57  ;;  %v675_v60 = vrot.slane %v673_v57, 4 }
 0x161   : >> { %699 = vrot.lane.b32.xlu0 %v674_v59, %s2840_s27 }
 0x162   : >> { %703 = vrot.lane.b32.xlu2 %v680_v61, %s2840_s27  ;;  %v677_v63 = vsel %vm2995_vm7, %v675_v60, %v676_v51 }
 0x163   : >> { %701 = vrot.lane.b32.xlu1 %v677_v63, %s2840_s27 }
 0x165   : >> { %v645_v4 = vld [vmem:[#allocation2 + $0x20] sm:$0xf] }
 0x166   : >> { %v685_v10 = vrot.slane %v645_v4, 5 }
 0x168   : >> { %v687_v15 = vrot.slane %v685_v10, 4 }
 0x169   : >> { %693 = vrot.lane.b32.xlu0 %v665_v1, %s2840_s27 }
 0x16d   : >> { %v611_v2 = vpop.permute.xlu1 %610 }
 0x16e   : >> { %634 = vst.msk [vmem:[#allocation2 + $0x1c] sm:$0xf] %vm626_vm3, %v611_v2 }
 0x175   : >> { %v644_v3 = vld [vmem:[#allocation2 + $0x1c] sm:$0xf] }
 0x176   : >> { %v682_v6 = vrot.slane %v644_v3, 5 }
 0x178   : >> { %v683_v7 = vsel %vm2995_vm7, %v681_v5, %v682_v6  ;;  %v684_v9 = vrot.slane %v682_v6, 4 }
 0x179   : >> { %705 = vrot.lane.b32.xlu1 %v683_v7, %s2840_s27 }
 0x17a   : >> { %v686_v11 = vsel %vm2995_vm7, %v684_v9, %v685_v10 }
 0x17b   : >> { %707 = vrot.lane.b32.xlu2 %v686_v11, %s2840_s27 }
 0x17e   : >> { %v615_v12 = vpop.permute.xlu0 %614 }
 0x17f   : >> { %636 = vst.msk [vmem:[#allocation2 + $0x24] sm:$0xf] %vm626_vm3, %v615_v12 }
 0x186   : >> { %v646_v13 = vld [vmem:[#allocation2 + $0x24] sm:$0xf] }
 0x187   : >> { %v688_v16 = vrot.slane %v646_v13, 5  ;;  %v735_v14 = vld [vmem:[#allocation2 + $0x24] sm:$0xf] }
 0x189   : >> { %v689_v17 = vsel %vm2995_vm7, %v687_v15, %v688_v16  ;;  %v690_v18 = vrot.slane %v688_v16, 4 }
 0x18a   : >> { %709 = vrot.lane.b32.xlu1 %v689_v17, %s2840_s27 }
 0x18b   : >> { %v692_v23 = vsel %vm2995_vm7, %v690_v18, %v691_v19 }
 0x18c   : >> { %711 = vrot.lane.b32.xlu0 %v692_v23, %s2840_s27 }
 0x1b4   : >> { %v698_v28 = vpop.permute.xlu2 %697 }
 0x1b5   : >> { %726 = vst.msk [vmem:[#allocation2 + $0x8] sm:$0xf] %vm723_vm8, %v698_v28  ;;  %v1023_v28 = vunpack.c.l.b16 %v992_v27 }
 0x1b7   : >> { %v1028_v30 = vpack.c.b16 %v1023_v28, %v1023_v28 }
 0x1b9   : >> { %v1037_v33 = vrot.slane %v1028_v30, 1 }
 0x1bc   : >> { %v704_v35 = vpop.permute.xlu2 %703  ;;  %v2371_v49 = vld [vmem:[#allocation2 + $0x8] sm:$0xe] }
 0x1bd   : >> { %729 = vst.msk [vmem:[#allocation2 + $0x14] sm:$0xf] %vm723_vm8, %v704_v35 }
 0x1c4   : >> { %v696_v42 = vpop.permute.xlu1 %695 }
 0x1c5   : >> { %725 = vst.msk [vmem:[#allocation2 + $0x4] sm:$0xf] %vm723_vm8, %v696_v42 }
 0x1cc   : >> { %v2796_v46 = vld [vmem:[#allocation2 + $0x4] sm:$0xff]  }
 0x1cd   : >> { %v796_v47 = vshll.u32 %v2796_v46, 16  ;;  %v794_v58 = vshrl.u32 %v2796_v46, 16 }
 0x1cf   : >> { %v798_v56 = vrot.slane %v796_v47, 1 }
 0x1d1   : >> { %v799_v61 = vor.u32 %v798_v56, %v794_v58 }
 0x1d3   : >> { %v700_v43 = vpop.permute.xlu0 %699 }
 0x1d4   : >> { %727 = vst.msk [vmem:[#allocation2 + $0xc] sm:$0xf] %vm723_vm8, %v700_v43 }
 0x1d5   : >> { %v708_v44 = vpop.permute.xlu2 %707  ;;  %v702_v45 = vpop.permute.xlu1 %701 }
 0x1d6   : >> { %731 = vst.msk [vmem:[#allocation2 + $0x1c] sm:$0xf] %vm723_vm8, %v708_v44 }
 0x1d7   : >> { %728 = vst.msk [vmem:[#allocation2 + $0x10] sm:$0xf] %vm723_vm8, %v702_v45 }
 0x1db   : >> { %v694_v48 = vpop.permute.xlu0 %693  ;;  %v2678_v50 = vld [vmem:[#allocation2 + $0x8] sm:$0xf0] }
 0x1dc   : >> { %724 = vst.msk [vmem:[#allocation2] sm:$0xf] %vm723_vm8, %v694_v48  ;;  %v2372_v51 = vor.u32 %v2678_v50, %v2371_v49  ;;  %v2759_v2 = vld [vmem:[#allocation2 + $0x8] sm:$0xff]  }
 0x1de   : >> { %v2679_v52 = vld [vmem:[#allocation2 + $0x10] sm:$0xff]  ;;  %v1030_v53 = vrot.slane %v2372_v51, 1 }
 0x1df   : >> { %v2798_v54 = vld [vmem:[#allocation2 + $0xc] sm:$0xff]   ;;  %v1031_v57 = vrot.slane %v2679_v52, 1 }
 0x1e0   : >> { %v801_v59 = vshll.u32 %v2798_v54, 16  ;;  %v805_v6 = vshrl.u32 %v2798_v54, 16  ;;  %v2760_v17 = vld [vmem:[#allocation2 + $0x10] sm:$0xff]  }
 0x1e1   : >> { %v1032_v60 = vsel %vm1029_vm9, %v1030_v53, %v1031_v57 }
 0x1e2   : >> { %v803_v62 = vrot.slane %v801_v59, 1  ;;  %2409 = vmatmul.msk.bf16.vlgmr.msra.gmra.mxu3 %vm383_vm12, %v1032_v60 }
 0x1e3   : >> { %v2732_v63 = vld [vmem:[#allocation2] sm:$0xff]  }
 0x1e4   : >> { %2353 = vmatmul.msk.bf16.vlgmr.msra.gmra.mxu2 %vm383_vm12, %v2732_v63  ;;  %v804_v0 = vsel %vm792_vm10, %v799_v61, %v803_v62  ;;  %v807_v10 = vor.u32 %v805_v6, %v803_v62 }
 0x1e5   : >> { %2325 = vmatmul.msk.bf16.vlgmr.msra.gmra.mxu1 %vm383_vm12, %v804_v0 }
 0x1eb   : >> { %v706_v1 = vpop.permute.xlu1 %705 }
 0x1ec   : >> { %730 = vst.msk [vmem:[#allocation2 + $0x18] sm:$0xf] %vm723_vm8, %v706_v1 }
 0x1f3   : >> { %v2680_v3 = vld [vmem:[#allocation2 + $0x18] sm:$0xff] }
 0x1f4   : >> { %v2800_v4 = vld [vmem:[#allocation2 + $0x14] sm:$0xff]   ;;  %2354 = vmatmul.msk.bf16.gmra.mxu2 %vm383_vm12, %v2759_v2  ;;  %v1033_v5 = vrot.slane %v2680_v3, 1 }
 0x1f5   : >> { %v809_v7 = vshll.u32 %v2800_v4, 16  ;;  %v813_v19 = vshrl.u32 %v2800_v4, 16  ;;  %v2761_v29 = vld [vmem:[#allocation2 + $0x18] sm:$0xff]  }
 0x1f6   : >> { %v1034_v9 = vsel %vm1029_vm9, %v1031_v57, %v1033_v5 }
 0x1f7   : >> { %v811_v11 = vrot.slane %v809_v7, 1  ;;  %2410 = vmatmul.msk.bf16.gmra.mxu3 %vm383_vm12, %v1034_v9 }
 0x1f9   : >> { %v812_v12 = vsel %vm792_vm10, %v807_v10, %v811_v11  ;;  %v815_v21 = vor.u32 %v813_v19, %v811_v11 }
 0x1fa   : >> { %2326 = vmatmul.msk.bf16.gmra.mxu1 %vm383_vm12, %v812_v12 }
 0x1fc   : >> { %v710_v13 = vpop.permute.xlu1 %709 }
 0x1fd   : >> { %732 = vst.msk [vmem:[#allocation2 + $0x20] sm:$0xf] %vm723_vm8, %v710_v13 }
 0x1fe   : >> { %v712_v15 = vpop.permute.xlu0 %711 }
 0x1ff   : >> { %v736_v16 = vsel %vm734_vm11, %v712_v15, %v735_v14  ;;  %vm1712_vm11 = vmand %vm1711_vm6, %vm1352_vm2 }
 0x200   : >> { %737 = vst [vmem:[#allocation2 + $0x24] sm:$0xf] %v736_v16 }
 0x204   : >> { %2355 = vmatmul.msk.bf16.gmra.mxu2 %vm383_vm12, %v2760_v17  ;;  %v2801_v18 = vld [vmem:[#allocation2 + $0x1c] sm:$0xff] }
 0x205   : >> { %v817_v23 = vshll.u32 %v2801_v18, 16  ;;  %v821_v31 = vshrl.u32 %v2801_v18, 16 }
 0x207   : >> { %v2681_v20 = vld [vmem:[#allocation2 + $0x20] sm:$0xff]  ;;  %v819_v22 = vrot.slane %v817_v23, 1 }
 0x208   : >> { %v1035_v24 = vrot.slane %v2681_v20, 1 }
 0x209   : >> { %v820_v25 = vsel %vm792_vm10, %v815_v21, %v819_v22  ;;  %v823_v32 = vor.u32 %v821_v31, %v819_v22 }
 0x20a   : >> { %2327 = vmatmul.msk.bf16.gmra.mxu1 %vm383_vm12, %v820_v25  ;;  %v1036_v26 = vsel %vm1029_vm9, %v1033_v5, %v1035_v24  ;;  %v1038_v34 = vsel %vm1029_vm9, %v1035_v24, %v1037_v33 }
 0x20b   : >> { %2411 = vmatmul.msk.bf16.gmra.mxu3 %vm383_vm12, %v1036_v26 }
 0x214   : >> { %2356 = vmatmul.msk.bf16.gmra.mxu2 %vm383_vm12, %v2761_v29 }
 0x21a   : >> { %2328 = vmatmul.msk.bf16.gmra.mxu1 %vm383_vm12, %v823_v32 }
 0x21b   : >> { %2412 = vmatmul.msk.bf16.gmra.mxu3 %vm383_vm12, %v1038_v34 }
 0x262   : >> { %v881_v35 = vpop.f32.mrf.mxu1 }
 0x265   : >> { %v1096_v36 = vpop.f32.mrf.mxu3 }
 0x267   : >> { %v964_v37 = vpop.f32.mrf.mxu2 }
 0x268   : >> { %v965_v38 = vadd.f32 %v964_v37, %v881_v35 }
 0x26a   : >> { %v1116_v41 = vadd.f32 %v1096_v36, %v965_v38  ;;  %v883_v44 = vpop.f32.mrf.mxu1 }
 0x26c   : >> { %v1125_v42 = vadd.f32 %v3120_v39, %v1116_v41 }
 0x26d   : >> { %v1098_v48 = vpop.f32.mrf.mxu3 }
 0x26e   : >> { %v1133_v43 = vmax.f32 %v1125_v42, 0.0 }
 0x26f   : >> { %v966_v45 = vpop.f32.mrf.mxu2 }
 0x270   : >> { %v1141_v46 = vpack.c.bf16 %v1133_v43, %v1133_v43  ;;  %v967_v47 = vadd.f32 %v966_v45, %v883_v44 }
 0x272   : >> { %1149 = vst.msk [vmem:[#allocation3] sm:$0xf] %vm462_vm13, %v1141_v46  ;;  %v1117_v49 = vadd.f32 %v1098_v48, %v967_v47 }
 0x274   : >> { %v1126_v50 = vadd.f32 %v3120_v39, %v1117_v49 }
 0x276   : >> { %v1134_v51 = vmax.f32 %v1126_v50, 0.0 }
 0x277   : >> { %v969_v52 = vpop.f32.mrf.mxu2  ;;  %v886_v53 = vpop.f32.mrf.mxu1 }
 0x278   : >> { %v1142_v54 = vpack.c.bf16 %v1134_v51, %v1134_v51  ;;  %v970_v56 = vadd.f32 %v969_v52, %v886_v53 }
 0x27a   : >> { %1150 = vst.msk [vmem:[#allocation3 + $0x4] sm:$0xf] %vm462_vm13, %v1142_v54  ;;  %v1101_v57 = vpop.f32.mrf.mxu3 }
 0x27b   : >> { %v1118_v58 = vadd.f32 %v1101_v57, %v970_v56 }
 0x27d   : >> { %v1127_v59 = vadd.f32 %v3120_v39, %v1118_v58 }
 0x27f   : >> { %v971_v60 = vpop.f32.mrf.mxu2  ;;  %v888_v61 = vpop.f32.mrf.mxu1  ;;  %v1135_v62 = vmax.f32 %v1127_v59, 0.0 }
 0x280   : >> { %v972_v1 = vadd.f32 %v971_v60, %v888_v61  ;;  %v1161_v60 = vld [vmem:[#allocation3] sm:$0xf] }
 0x281   : >> { %v1162_v63 = vld [vmem:[#allocation3 + $0x4] sm:$0xf]  ;;  %v1143_v0 = vpack.c.bf16 %v1135_v62, %v1135_v62 }
 0x282   : >> { %v1179_v2 = vshll.u32 %v1162_v63, 16  ;;  %v1183_v3 = vshrl.u32 %v1162_v63, 16  ;;  %v1103_v4 = vpop.f32.mrf.mxu3 }
 0x283   : >> { %1151 = vst.msk [vmem:[#allocation3 + $0x8] sm:$0xf] %vm462_vm13, %v1143_v0  ;;  %v1119_v5 = vadd.f32 %v1103_v4, %v972_v1  ;;  %v1170_v1 = vshrl.u32 %v1161_v60, 16 }
 0x284   : >> { %v3129_v7 = vrot.slane %v1179_v2, 5  ;;  %v1185_v9 = vrot.slane %v1183_v3, 4  ;;  %v1173_v2 = vshll.u32 %v1161_v60, 16 }
 0x285   : >> { %v1128_v6 = vadd.f32 %v3120_v39, %v1119_v5 }
 0x286   : >> { %v1186_v14 = vor.u32 %v1185_v9, %v3129_v7 }
 0x287   : >> { %v974_v10 = vpop.f32.mrf.mxu2  ;;  %v1136_v11 = vmax.f32 %v1128_v6, 0.0  ;;  %v891_v12 = vpop.f32.mrf.mxu1 }
 0x288   : >> { %v975_v18 = vadd.f32 %v974_v10, %v891_v12  ;;  %v1187_v19 = vrot.slane %v1186_v14, 4  ;;  %v1175_v14 = vrot.slane %v1173_v2, 5  ;;  %v2709_v2 = vld [vmem:[%s3405_s3 + $0x88] sm:$0xff] }
 0x289   : >> { %v1144_v13 = vpack.c.bf16 %v1136_v11, %v1136_v11  ;;  %1659 = vmatpush.bf16.msrb.mxu3 %v2709_v2 }
 0x28a   : >> { %v1163_v15 = vld [vmem:[#allocation3 + $0x8] sm:$0xf] }
 0x28b   : >> { %1152 = vst.msk [vmem:[#allocation3 + $0xc] sm:$0xf] %vm462_vm13, %v1144_v13  ;;  %v1189_v16 = vshll.u32 %v1163_v15, 16  ;;  %v1193_v17 = vshrl.u32 %v1163_v15, 16  ;;  %v1172_v13 = vrot.slane %v1170_v1, 4  ;;  %v2693_v1 = vld [vmem:[%s3405_s3 + $0x28] sm:$0xff] }
 0x28c   : >> { %1551 = vmatpush.bf16.msrb.mxu2 %v2693_v1 }
 0x28d   : >> { %v1191_v23 = vrot.slane %v1189_v16, 5  ;;  %v1195_v20 = vrot.slane %v1193_v17, 4 }
 0x28e   : >> { %v1106_v22 = vpop.f32.mrf.mxu3 }
 0x28f   : >> { %v976_v21 = vpop.f32.mrf.mxu2  ;;  %v1120_v24 = vadd.f32 %v1106_v22, %v975_v18  ;;  %v893_v25 = vpop.f32.mrf.mxu1  ;;  %v1192_v26 = vsel %vm2944_vm0, %v1187_v19, %v1191_v23  ;;  %v1196_v28 = vor.u32 %v1195_v20, %v1191_v23  ;;  %v1158_v20 = vld [vmem:[#allocation3 + $0x1c] sm:$0xf]  ;;  %v1176_v22 = vor.u32 %v1175_v14, %v1172_v13 }
 0x290   : >> { %1250 = vrot.lane.b32.xlu2 %v1192_v26, %s2839_s26  ;;  %v977_v32 = vadd.f32 %v976_v21, %v893_v25 }
 0x291   : >> { %v1129_v27 = vadd.f32 %v3120_v39, %v1120_v24  ;;  %v1197_v34 = vrot.slane %v1196_v28, 4  ;;  %v1177_v28 = vrot.slane %v1176_v22, 4 }
 0x292   : >> { %v1164_v29 = vld [vmem:[#allocation3 + $0xc] sm:$0xf] }
 0x293   : >> { %v1137_v30 = vmax.f32 %v1129_v27, 0.0  ;;  %v1199_v31 = vshll.u32 %v1164_v29, 16  ;;  %v1203_v36 = vshrl.u32 %v1164_v29, 16 }
 0x295   : >> { %v1145_v33 = vpack.c.bf16 %v1137_v30, %v1137_v30  ;;  %v1201_v35 = vrot.slane %v1199_v31, 5  ;;  %v1205_v45 = vrot.slane %v1203_v36, 4 }
 0x296   : >> { %v1108_v37 = vpop.f32.mrf.mxu3 }
 0x297   : >> { %1153 = vst.msk [vmem:[#allocation3 + $0x10] sm:$0xf] %vm462_vm13, %v1145_v33  ;;  %v1121_v38 = vadd.f32 %v1108_v37, %v977_v32  ;;  %v1202_v41 = vsel %vm2944_vm0, %v1197_v34, %v1201_v35  ;;  %v979_v42 = vpop.f32.mrf.mxu2  ;;  %v896_v43 = vpop.f32.mrf.mxu1  ;;  %v1206_v49 = vor.u32 %v1205_v45, %v1201_v35  ;;  %v1182_v32 = vsel %vm2944_vm0, %v1177_v28, %v3129_v7  ;;  %v2707_v28 = vld [vmem:[%s3405_s3 + $0x78] sm:$0xff] }
 0x298   : >> { %1252 = vrot.lane.b32.xlu0 %v1202_v41, %s2839_s26  ;;  %v980_v48 = vadd.f32 %v979_v42, %v896_v43 }
 0x299   : >> { %v1130_v44 = vadd.f32 %v3120_v39, %v1121_v38  ;;  %v1207_v57 = vrot.slane %v1206_v49, 4 }
 0x29b   : >> { %v1138_v46 = vmax.f32 %v1130_v44, 0.0 }
 0x29d   : >> { %v1146_v47 = vpack.c.bf16 %v1138_v46, %v1138_v46 }
 0x29e   : >> { %v1111_v50 = vpop.f32.mrf.mxu3  ;;  %v1165_v51 = vld [vmem:[#allocation3 + $0x10] sm:$0xf] }
 0x29f   : >> { %1154 = vst.msk [vmem:[#allocation3 + $0x14] sm:$0xf] %vm462_vm13, %v1146_v47  ;;  %v1122_v52 = vadd.f32 %v1111_v50, %v980_v48  ;;  %v1209_v53 = vshll.u32 %v1165_v51, 16  ;;  %v1213_v54 = vshrl.u32 %v1165_v51, 16  ;;  %v981_v61 = vpop.f32.mrf.mxu2  ;;  %v898_v62 = vpop.f32.mrf.mxu1 }
 0x2a0   : >> { %v982_v4 = vadd.f32 %v981_v61, %v898_v62 }
 0x2a1   : >> { %v1131_v56 = vadd.f32 %v3120_v39, %v1122_v52  ;;  %v1211_v58 = vrot.slane %v1209_v53, 5  ;;  %v1215_v59 = vrot.slane %v1213_v54, 4 }
 0x2a3   : >> { %v1139_v63 = vmax.f32 %v1131_v56, 0.0  ;;  %v1212_v0 = vsel %vm2944_vm0, %v1207_v57, %v1211_v58  ;;  %v1216_v5 = vor.u32 %v1215_v59, %v1211_v58 }
 0x2a4   : >> { %1254 = vrot.lane.b32.xlu1 %v1212_v0, %s2839_s26 }
 0x2a5   : >> { %v1147_v3 = vpack.c.bf16 %v1139_v63, %v1139_v63  ;;  %v1217_v16 = vrot.slane %v1216_v5, 4  ;;  %v2692_v5 = vld [vmem:[%s3405_s3 + $0x20] sm:$0xff] }
 0x2a6   : >> { %v1113_v6 = vpop.f32.mrf.mxu3  ;;  %v1166_v9 = vld [vmem:[#allocation3 + $0x14] sm:$0xf]  ;;  %1552 = vmatpush.bf16.msrb.mxu2 %v2692_v5 }
 0x2a7   : >> { %1155 = vst.msk [vmem:[#allocation3 + $0x18] sm:$0xf] %vm462_vm13, %v1147_v3  ;;  %v1123_v10 = vadd.f32 %v1113_v6, %v982_v4  ;;  %v1219_v11 = vshll.u32 %v1166_v9, 16  ;;  %v1223_v12 = vshrl.u32 %v1166_v9, 16  ;;  %v2700_v3 = vld [vmem:[%s3405_s3 + $0x58] sm:$0xff] }
 0x2a8   : >> { %1475 = vmatpush.bf16.msrb.mxu1 %v2700_v3 }
 0x2a9   : >> { %v1132_v15 = vadd.f32 %v3120_v39, %v1123_v10  ;;  %v1221_v17 = vrot.slane %v1219_v11, 5  ;;  %v1225_v18 = vrot.slane %v1223_v12, 4 }
 0x2ab   : >> { %v1140_v19 = vmax.f32 %v1132_v15, 0.0  ;;  %v1222_v23 = vsel %vm2944_vm0, %v1217_v16, %v1221_v17  ;;  %v1226_v24 = vor.u32 %v1225_v18, %v1221_v17 }
 0x2ac   : >> { %1256 = vrot.lane.b32.xlu2 %v1222_v23, %s2839_s26 }
 0x2ad   : >> { %v1148_v21 = vpack.c.bf16 %v1140_v19, %v1140_v19  ;;  %v1227_v29 = vrot.slane %v1226_v24, 4 }
 0x2ae   : >> { %v1167_v25 = vld [vmem:[#allocation3 + $0x18] sm:$0xf] }
 0x2af   : >> { %v1159_v26 = vsel %vm1157_vm15, %v1148_v21, %v1158_v20  ;;  %v1229_v27 = vshll.u32 %v1167_v25, 16  ;;  %v1233_v39 = vshrl.u32 %v1167_v25, 16 }
 0x2b0   : >> { %1160 = vst [vmem:[#allocation3 + $0x1c] sm:$0xf] %v1159_v26  ;;  %v2708_v26 = vld [vmem:[%s3405_s3 + $0x80] sm:$0xff] }
 0x2b1   : >> { %v1231_v30 = vrot.slane %v1229_v27, 5  ;;  %v1235_v31 = vrot.slane %v1233_v39, 4  ;;  %v2699_v27 = vld [vmem:[%s3405_s3 + $0x50] sm:$0xff]  ;;  %v2691_v39 = vld [vmem:[%s3405_s3 + $0x18] sm:$0xff]  ;;  %1660 = vmatpush.bf16.msrb.mxu3 %v2708_v26 }
 0x2b2   : >> { %1476 = vmatpush.bf16.msrb.mxu1 %v2699_v27  ;;  %1553 = vmatpush.bf16.msrb.mxu2 %v2691_v39 }
 0x2b3   : >> { %v1232_v33 = vsel %vm2944_vm0, %v1227_v29, %v1231_v30  ;;  %v1236_v34 = vor.u32 %v1235_v31, %v1231_v30  ;;  %v2698_v29 = vld [vmem:[%s3405_s3 + $0x48] sm:$0xff]  ;;  %v2690_v30 = vld [vmem:[%s3405_s3 + $0x10] sm:$0xff] }
 0x2b4   : >> { %1248 = vrot.lane.b32.xlu2 %v1182_v32, %s2839_s26  ;;  %1258 = vrot.lane.b32.xlu0 %v1232_v33, %s2839_s26  ;;  %v2706_v31 = vld [vmem:[%s3405_s3 + $0x70] sm:$0xff]  ;;  %v2697_v32 = vld [vmem:[%s3405_s3 + $0x40] sm:$0xff] }
 0x2b5   : >> { %v1237_v38 = vrot.slane %v1236_v34, 4  ;;  %1661 = vmatpush.bf16.msrb.mxu3 %v2707_v28  ;;  %v2689_v33 = vld [vmem:[%s3405_s3 + $0x8] sm:$0xff] }
 0x2b6   : >> { %1477 = vmatpush.bf16.msrb.mxu1 %v2698_v29  ;;  %1554 = vmatpush.bf16.msrb.mxu2 %v2690_v30  ;;  %v2705_v34 = vld [vmem:[%s3405_s3 + $0x68] sm:$0xff]  ;;  %v3270_v30 = vperm.slane %v2893_v8, 2 }
 0x2b7   : >> { %v1168_v35 = vld [vmem:[#allocation3 + $0x1c] sm:$0xf] }
 0x2b8   : >> { %v1239_v36 = vshll.u32 %v1168_v35, 16  ;;  %v1243_v37 = vshrl.u32 %v1168_v35, 16 }
 0x2b9   : >> { %1662 = vmatpush.bf16.msrb.mxu3 %v2706_v31 }
 0x2ba   : >> { %v1241_v41 = vrot.slane %v1239_v36, 5  ;;  %v1245_v42 = vrot.slane %v1243_v37, 4  ;;  %1478 = vmatpush.bf16.msrb.mxu1 %v2697_v32  ;;  %1555 = vmatpush.bf16.msrb.mxu2 %v2689_v33  ;;  %v2696_v36 = vld [vmem:[%s3405_s3 + $0x38] sm:$0xff]  ;;  %v2688_v37 = vld [vmem:[%s3405_s3] sm:$0xff] }
 0x2bc   : >> { %v1242_v43 = vsel %vm2944_vm0, %v1237_v38, %v1241_v41  ;;  %v1246_v44 = vor.u32 %v1245_v42, %v1241_v41  ;;  %v2704_v38 = vld [vmem:[%s3405_s3 + $0x60] sm:$0xff]  ;;  %v2695_v41 = vld [vmem:[%s3405_s3 + $0x30] sm:$0xff] }
 0x2bd   : >> { %1260 = vrot.lane.b32.xlu1 %v1242_v43, %s2839_s26  ;;  %1663 = vmatpush.bf16.msrb.mxu3 %v2705_v34 }
 0x2be   : >> { %v1247_v7 = vrot.slane %v1246_v44, 4  ;;  %1479 = vmatpush.bf16.msrb.mxu1 %v2696_v36  ;;  %1556 = vmatpush.bf16.msrb.mxu2 %v2688_v37 }
 0x2c0   : >> { %1262 = vrot.lane.b32.xlu0 %v1247_v7, %s2839_s26 }
 0x2c1   : >> { %1664 = vmatpush.bf16.msrb.mxu3 %v2704_v38 }
 0x2c2   : >> { %1480 = vmatpush.bf16.msrb.mxu1 %v2695_v41 }
 0x2ea   : >> { %v1251_v45 = vpop.permute.xlu2 %1250 }
 0x2eb   : >> { %1273 = vst.msk [vmem:[#allocation3 + $0x4] sm:$0xf] %vm626_vm3, %v1251_v45 }
 0x2f2   : >> { %v1282_v48 = vld [vmem:[#allocation3 + $0x4] sm:$0xf] }
 0x2f3   : >> { %v1299_v50 = vrot.slane %v1282_v48, 5 }
 0x2f5   : >> { %v1301_v52 = vrot.slane %v1299_v50, 4 }
 0x306   : >> { %v1257_v46 = vpop.permute.xlu2 %1256 }
 0x307   : >> { %1276 = vst.msk [vmem:[#allocation3 + $0x10] sm:$0xf] %vm626_vm3, %v1257_v46 }
 0x30a   : >> { %v1253_v47 = vpop.permute.xlu0 %1252 }
 0x30b   : >> { %1274 = vst.msk [vmem:[#allocation3 + $0x8] sm:$0xf] %vm626_vm3, %v1253_v47 }
 0x30e   : >> { %v1249_v49 = vpop.permute.xlu2 %1248  ;;  %v1285_v58 = vld [vmem:[#allocation3 + $0x10] sm:$0xf] }
 0x30f   : >> { %1272 = vst.msk [vmem:[#allocation3] sm:$0xf] %vm626_vm3, %v1249_v49  ;;  %v1308_v63 = vrot.slane %v1285_v58, 5 }
 0x311   : >> { %v1310_v13 = vrot.slane %v1308_v63, 4 }
 0x312   : >> { %v1283_v51 = vld [vmem:[#allocation3 + $0x8] sm:$0xf] }
 0x313   : >> { %v1302_v53 = vrot.slane %v1283_v51, 5 }
 0x315   : >> { %v1303_v54 = vsel %vm2995_vm7, %v1301_v52, %v1302_v53  ;;  %v1304_v59 = vrot.slane %v1302_v53, 4 }
 0x316   : >> { %v1255_v56 = vpop.permute.xlu1 %1254  ;;  %1322 = vrot.lane.b32.xlu1 %v1303_v54, %s2840_s27  ;;  %v1281_v4 = vld [vmem:[#allocation3] sm:$0xe] }
 0x317   : >> { %1275 = vst.msk [vmem:[#allocation3 + $0xc] sm:$0xf] %vm626_vm3, %v1255_v56  ;;  %v2413_v9 = vrot.slane %v1281_v4, 9 }
 0x319   : >> { %v1300_v10 = vsel %vm2995_vm7, %v2413_v9, %v1299_v50 }
 0x31e   : >> { %v1284_v57 = vld [vmem:[#allocation3 + $0xc] sm:$0xf] }
 0x31f   : >> { %v1305_v60 = vrot.slane %v1284_v57, 5 }
 0x321   : >> { %v1306_v61 = vsel %vm2995_vm7, %v1304_v59, %v1305_v60  ;;  %v1307_v62 = vrot.slane %v1305_v60, 4 }
 0x322   : >> { %1324 = vrot.lane.b32.xlu2 %v1306_v61, %s2840_s27 }
 0x323   : >> { %v1309_v0 = vsel %vm2995_vm7, %v1307_v62, %v1308_v63 }
 0x324   : >> { %1326 = vrot.lane.b32.xlu0 %v1309_v0, %s2840_s27 }
 0x326   : >> { %v1259_v6 = vpop.permute.xlu0 %1258 }
 0x327   : >> { %1277 = vst.msk [vmem:[#allocation3 + $0x14] sm:$0xf] %vm626_vm3, %v1259_v6 }
 0x32c   : >> { %1320 = vrot.lane.b32.xlu0 %v1300_v10, %s2840_s27 }
 0x32e   : >> { %v1286_v11 = vld [vmem:[#allocation3 + $0x14] sm:$0xf] }
 0x32f   : >> { %v1261_v12 = vpop.permute.xlu1 %1260  ;;  %v1311_v14 = vrot.slane %v1286_v11, 5 }
 0x330   : >> { %1278 = vst.msk [vmem:[#allocation3 + $0x18] sm:$0xf] %vm626_vm3, %v1261_v12 }
 0x331   : >> { %v1312_v15 = vsel %vm2995_vm7, %v1310_v13, %v1311_v14  ;;  %v1313_v18 = vrot.slane %v1311_v14, 4 }
 0x332   : >> { %1328 = vrot.lane.b32.xlu1 %v1312_v15, %s2840_s27  ;;  %v1263_v16 = vpop.permute.xlu0 %1262 }
 0x333   : >> { %1280 = vst.msk [vmem:[#allocation3 + $0x1c] sm:$0x7] %vm1279_vm14, %v1263_v16 }
 0x337   : >> { %v1287_v17 = vld [vmem:[#allocation3 + $0x18] sm:$0xf] }
 0x338   : >> { %v1314_v19 = vrot.slane %v1287_v17, 5 }
 0x33a   : >> { %v1315_v23 = vsel %vm2995_vm7, %v1313_v18, %v1314_v19  ;;  %v1288_v20 = vld [vmem:[#allocation3 + $0x1c] sm:$0xf]  ;;  %v1316_v24 = vrot.slane %v1314_v19, 4 }
 0x33b   : >> { %1330 = vrot.lane.b32.xlu2 %v1315_v23, %s2840_s27  ;;  %v1317_v21 = vrot.slane %v1288_v20, 5  ;;  %v1354_v0 = vld [vmem:[#allocation3 + $0x1c] sm:$0x7] }
 0x33d   : >> { %v1319_v22 = vrot.slane %v1317_v21, 4  ;;  %v1318_v25 = vsel %vm2995_vm7, %v1316_v24, %v1317_v21 }
 0x33f   : >> { %1334 = vrot.lane.b32.xlu1 %v1319_v22, %s2840_s27 }
 0x343   : >> { %1332 = vrot.lane.b32.xlu2 %v1318_v25, %s2840_s27 }
 0x37c   : >> { %v1325_v35 = vpop.permute.xlu2 %1324 }
 0x37d   : >> { %1346 = vst.msk [vmem:[#allocation3 + $0x8] sm:$0xf] %vm723_vm8, %v1325_v35 }
 0x384   : >> { %v2498_v50 = vld [vmem:[#allocation3 + $0x8] sm:$0xe] }
 0x388   : >> { %v1323_v42 = vpop.permute.xlu1 %1322 }
 0x389   : >> { %1345 = vst.msk [vmem:[#allocation3 + $0x4] sm:$0xf] %vm723_vm8, %v1323_v42 }
 0x390   : >> { %v2803_v49 = vld [vmem:[#allocation3 + $0x4] sm:$0xff]  }
 0x391   : >> { %v1408_v53 = vshll.u32 %v2803_v49, 16  ;;  %v1406_v2 = vshrl.u32 %v2803_v49, 16 }
 0x393   : >> { %v1410_v62 = vrot.slane %v1408_v53, 1 }
 0x395   : >> { %v1331_v43 = vpop.permute.xlu2 %1330  ;;  %v1411_v5 = vor.u32 %v1410_v62, %v1406_v2 }
 0x396   : >> { %1349 = vst.msk [vmem:[#allocation3 + $0x14] sm:$0xf] %vm723_vm8, %v1331_v43  ;;  %v1327_v44 = vpop.permute.xlu0 %1326 }
 0x397   : >> { %1347 = vst.msk [vmem:[#allocation3 + $0xc] sm:$0xf] %vm723_vm8, %v1327_v44 }
 0x39d   : >> { %v1333_v7 = vpop.permute.xlu2 %1332  ;;  %v2428_v12 = vld [vmem:[#allocation3 + $0x14] sm:$0xf] }
 0x39e   : >> { %1350 = vst.msk [vmem:[#allocation3 + $0x18] sm:$0xf] %vm723_vm8, %v1333_v7  ;;  %v1321_v45 = vpop.permute.xlu0 %1320  ;;  %v2701_v48 = vld [vmem:[#allocation3 + $0x8] sm:$0xf0]  ;;  %v1362_v18 = vld [vmem:[#allocation3 + $0x14] sm:$0x7] }
 0x39f   : >> { %1344 = vst.msk [vmem:[#allocation3] sm:$0xf] %vm723_vm8, %v1321_v45  ;;  %v2499_v51 = vor.u32 %v2701_v48, %v2498_v50  ;;  %v2762_v52 = vld [vmem:[#allocation3 + $0x8] sm:$0xff]   ;;  %v1500_v20 = vunpack.c.l.b16 %v1362_v18 }
 0x3a0   : >> { %v2754_v57 = vunpack.c.h.b16 %v2762_v52 }
 0x3a1   : >> { %v1607_v59 = vrot.slane %v2499_v51, 1 }
 0x3a4   : >> { %v1329_v46 = vpop.permute.xlu1 %1328 }
 0x3a5   : >> { %1348 = vst.msk [vmem:[#allocation3 + $0x10] sm:$0xf] %vm723_vm8, %v1329_v46  ;;  %v2694_v10 = vld [vmem:[#allocation3 + $0x14] sm:$0x70] }
 0x3a6   : >> { %v2748_v47 = vld [vmem:[#allocation3] sm:$0xff]   ;;  %v2429_v13 = vor.u32 %v2694_v10, %v2428_v12 }
 0x3a7   : >> { %2481 = vmatmul.msk.bf16.vlgmr.msrb.gmra.mxu2 %vm383_vm12, %v2748_v47 }
 0x3a8   : >> { %v1421_v16 = vshll.u32 %v2429_v13, 16  ;;  %v1425_v24 = vshrl.u32 %v2429_v13, 16 }
 0x3aa   : >> { %v1423_v23 = vrot.slane %v1421_v16, 1 }
 0x3ac   : >> { %v2702_v54 = vld [vmem:[#allocation3 + $0x10] sm:$0xff]  ;;  %v1427_v25 = vor.u32 %v1425_v24, %v1423_v23 }
 0x3ad   : >> { %v1361_v56 = vld [vmem:[#allocation3 + $0x10] sm:$0xf]  ;;  %v1608_v60 = vrot.slane %v2702_v54, 1 }
 0x3ae   : >> { %v1399_v58 = vunpack.c.l.b16 %v1361_v56 }
 0x3af   : >> { %v1609_v63 = vsel %vm1029_vm9, %v1607_v59, %v1608_v60 }
 0x3b0   : >> { %v1403_v61 = vpack.c.b16 %v1399_v58, %v2754_v57  ;;  %2532 = vmatmul.msk.bf16.vlgmr.msrb.gmra.mxu3 %vm383_vm12, %v1609_v63  ;;  %v1503_v22 = vpack.c.b16 %v1500_v20, %v1399_v58 }
 0x3b1   : >> { %v1335_v1 = vpop.permute.xlu1 %1334 }
 0x3b2   : >> { %v1413_v3 = vshll.u32 %v1403_v61, 16  ;;  %v1355_v4 = vsel %vm1353_vm5, %v1335_v1, %v1354_v0  ;;  %v1417_v15 = vshrl.u32 %v1403_v61, 16 }
 0x3b3   : >> { %1356 = vst [vmem:[#allocation3 + $0x1c] sm:$0x7] %v1355_v4 }
 0x3b4   : >> { %v1415_v6 = vrot.slane %v1413_v3, 1 }
 0x3b6   : >> { %v1416_v9 = vsel %vm792_vm10, %v1411_v5, %v1415_v6  ;;  %v1419_v19 = vor.u32 %v1417_v15, %v1415_v6 }
 0x3b7   : >> { %2454 = vmatmul.msk.bf16.vlgmr.msrb.gmra.mxu1 %vm383_vm12, %v1416_v9  ;;  %2482 = vmatmul.msk.bf16.gmra.mxu2 %vm383_vm12, %v2762_v52 }
 0x3b8   : >> { %v1424_v21 = vsel %vm792_vm10, %v1419_v19, %v1423_v23 }
 0x3ba   : >> { %v2703_v11 = vld [vmem:[#allocation3 + $0x18] sm:$0xff] }
 0x3bb   : >> { %v1610_v14 = vrot.slane %v2703_v11, 1 }
 0x3bd   : >> { %v1611_v17 = vsel %vm1029_vm9, %v1608_v60, %v1610_v14 }
 0x3c0   : >> { %2533 = vmatmul.msk.bf16.gmra.mxu3 %vm383_vm12, %v1611_v17 }
 0x3c7   : >> { %2455 = vmatmul.msk.bf16.gmra.mxu1 %vm383_vm12, %v1424_v21  ;;  %2483 = vmatmul.msk.bf16.gmra.mxu2 %vm383_vm12, %v1503_v22 }
 0x3d0   : >> { %2534 = vmatmul.msk.bf16.gmra.mxu3 %vm383_vm12, %v1610_v14 }
 0x3d7   : >> { %2456 = vmatmul.msk.bf16.gmra.mxu1 %vm383_vm12, %v1427_v25 }
 0x42a   : >> { %v1558_v26 = vpop.f32.mrf.mxu2 }
 0x432   : >> { %v1560_v27 = vpop.f32.mrf.mxu2 }
 0x433   : >> { %v1666_v29 = vpop.f32.mrf.mxu3 }
 0x434   : >> { %v1482_v39 = vpop.f32.mrf.mxu1 }
 0x435   : >> { %v1559_v28 = vadd.f32 %v1558_v26, %v1482_v39 }
 0x437   : >> { %v1681_v31 = vadd.f32 %v1666_v29, %v1559_v28 }
 0x439   : >> { %v1688_v32 = vadd.f32 %v3270_v30, %v1681_v31 }
 0x43a   : >> { %v1563_v38 = vpop.f32.mrf.mxu2 }
 0x43b   : >> { %v1694_v33 = vmax.f32 %v1688_v32, 0.0  ;;  %v1668_v37 = vpop.f32.mrf.mxu3 }
 0x43c   : >> { %v1484_v34 = vpop.f32.mrf.mxu1 }
 0x43d   : >> { %v1700_v35 = vpack.c.bf16 %v1694_v33, %v1694_v33  ;;  %v1561_v36 = vadd.f32 %v1560_v27, %v1484_v34 }
 0x43f   : >> { %1706 = vst.msk [vmem:[#allocation4] sm:$0xf] %vm462_vm13, %v1700_v35  ;;  %v1682_v41 = vadd.f32 %v1668_v37, %v1561_v36 }
 0x441   : >> { %v1689_v42 = vadd.f32 %v3270_v30, %v1682_v41 }
 0x442   : >> { %v1565_v51 = vpop.f32.mrf.mxu2 }
 0x443   : >> { %v1695_v43 = vmax.f32 %v1689_v42, 0.0  ;;  %v1671_v46 = vpop.f32.mrf.mxu3 }
 0x444   : >> { %v1487_v44 = vpop.f32.mrf.mxu1 }
 0x445   : >> { %v1701_v7 = vpack.c.bf16 %v1695_v43, %v1695_v43  ;;  %v1564_v45 = vadd.f32 %v1563_v38, %v1487_v44  ;;  %v1713_v44 = vld [vmem:[#allocation4 + $0x14] sm:$0x7] }
 0x446   : >> { %v1716_v47 = vld [vmem:[#allocation4] sm:$0xf] }
 0x447   : >> { %1707 = vst.msk [vmem:[#allocation4 + $0x4] sm:$0xf] %vm462_vm13, %v1701_v7  ;;  %v1683_v48 = vadd.f32 %v1671_v46, %v1564_v45  ;;  %v1723_v49 = vshrl.u32 %v1716_v47, 16  ;;  %v1726_v50 = vshll.u32 %v1716_v47, 16 }
 0x449   : >> { %v1690_v52 = vadd.f32 %v3270_v30, %v1683_v48  ;;  %v1725_v53 = vrot.slane %v1723_v49, 4  ;;  %v1728_v54 = vrot.slane %v1726_v50, 5 }
 0x44a   : >> { %v1568_v6 = vpop.f32.mrf.mxu2 }
 0x44b   : >> { %v1696_v56 = vmax.f32 %v1690_v52, 0.0  ;;  %v1673_v60 = vpop.f32.mrf.mxu3  ;;  %v1729_v61 = vor.u32 %v1728_v54, %v1725_v53 }
 0x44c   : >> { %v1489_v57 = vpop.f32.mrf.mxu1 }
 0x44d   : >> { %v1702_v58 = vpack.c.bf16 %v1696_v56, %v1696_v56  ;;  %v1566_v59 = vadd.f32 %v1565_v51, %v1489_v57  ;;  %v1730_v3 = vrot.slane %v1729_v61, 4 }
 0x44e   : >> { %v1717_v62 = vld [vmem:[#allocation4 + $0x4] sm:$0xf] }
 0x44f   : >> { %1708 = vst.msk [vmem:[#allocation4 + $0x8] sm:$0xf] %vm462_vm13, %v1702_v58  ;;  %v1684_v63 = vadd.f32 %v1673_v60, %v1566_v59  ;;  %v1732_v0 = vshll.u32 %v1717_v62, 16  ;;  %v1736_v1 = vshrl.u32 %v1717_v62, 16 }
 0x451   : >> { %v1691_v2 = vadd.f32 %v3270_v30, %v1684_v63  ;;  %v1734_v4 = vrot.slane %v1732_v0, 5  ;;  %v1738_v5 = vrot.slane %v1736_v1, 4 }
 0x452   : >> { %v1570_v26 = vpop.f32.mrf.mxu2 }
 0x453   : >> { %v1697_v9 = vmax.f32 %v1691_v2, 0.0  ;;  %v1735_v10 = vsel %vm2944_vm0, %v1730_v3, %v1734_v4  ;;  %v1676_v14 = vpop.f32.mrf.mxu3  ;;  %v1739_v15 = vor.u32 %v1738_v5, %v1734_v4 }
 0x454   : >> { %v1492_v11 = vpop.f32.mrf.mxu1  ;;  %1781 = vrot.lane.b32.xlu2 %v1735_v10, %s2839_s26 }
 0x455   : >> { %v1703_v12 = vpack.c.bf16 %v1697_v9, %v1697_v9  ;;  %v1569_v13 = vadd.f32 %v1568_v6, %v1492_v11  ;;  %v1740_v20 = vrot.slane %v1739_v15, 4  ;;  %v2730_v6 = vld [vmem:[%s3406_s4 + $0x88] sm:$0xff]  ;;  %v2721_v11 = vld [vmem:[%s3406_s4 + $0x50] sm:$0xff] }
 0x456   : >> { %v1718_v16 = vld [vmem:[#allocation4 + $0x8] sm:$0xf]  ;;  %2122 = vmatpush.bf16.msra.mxu2 %v2730_v6  ;;  %1965 = vmatpush.bf16.msrb.mxu0 %v2721_v11 }
 0x457   : >> { %1709 = vst.msk [vmem:[#allocation4 + $0xc] sm:$0xf] %vm462_vm13, %v1703_v12  ;;  %v1685_v17 = vadd.f32 %v1676_v14, %v1569_v13  ;;  %v1742_v18 = vshll.u32 %v1718_v16, 16  ;;  %v1746_v19 = vshrl.u32 %v1718_v16, 16  ;;  %v2720_v14 = vld [vmem:[%s3406_s4 + $0x48] sm:$0xff] }
 0x459   : >> { %v1692_v23 = vadd.f32 %v3270_v30, %v1685_v17  ;;  %v1744_v21 = vrot.slane %v1742_v18, 5  ;;  %v1748_v22 = vrot.slane %v1746_v19, 4 }
 0x45a   : >> { %1966 = vmatpush.bf16.msrb.mxu0 %v2720_v14 }
 0x45b   : >> { %v1698_v24 = vmax.f32 %v1692_v23, 0.0  ;;  %v1745_v25 = vsel %vm2944_vm0, %v1740_v20, %v1744_v21  ;;  %v1678_v29 = vpop.f32.mrf.mxu3  ;;  %v1749_v31 = vor.u32 %v1748_v22, %v1744_v21 }
 0x45c   : >> { %v1494_v27 = vpop.f32.mrf.mxu1  ;;  %1783 = vrot.lane.b32.xlu0 %v1745_v25, %s2839_s26 }
 0x45d   : >> { %v1704_v39 = vpack.c.bf16 %v1698_v24, %v1698_v24  ;;  %v1571_v28 = vadd.f32 %v1570_v26, %v1494_v27  ;;  %v1750_v37 = vrot.slane %v1749_v31, 4 }
 0x45e   : >> { %v1719_v32 = vld [vmem:[#allocation4 + $0xc] sm:$0xf] }
 0x45f   : >> { %1710 = vst.msk [vmem:[#allocation4 + $0x10] sm:$0xf] %vm462_vm13, %v1704_v39  ;;  %v1686_v33 = vadd.f32 %v1678_v29, %v1571_v28  ;;  %v1752_v34 = vshll.u32 %v1719_v32, 16  ;;  %v1756_v35 = vshrl.u32 %v1719_v32, 16  ;;  %vm1804_vm13 = vcmask 517376  }
 0x461   : >> { %v1693_v36 = vadd.f32 %v3270_v30, %v1686_v33  ;;  %v1754_v38 = vrot.slane %v1752_v34, 5  ;;  %v1758_v41 = vrot.slane %v1756_v35, 4  ;;  %v2715_v33 = vld [vmem:[%s3406_s4 + $0x28] sm:$0xff]  ;;  %v2719_v34 = vld [vmem:[%s3406_s4 + $0x40] sm:$0xff] }
 0x462   : >> { %v2729_v35 = vld [vmem:[%s3406_s4 + $0x80] sm:$0xff]  ;;  %2031 = vmatpush.bf16.msra.mxu1 %v2715_v33  ;;  %1967 = vmatpush.bf16.msrb.mxu0 %v2719_v34 }
 0x463   : >> { %v1699_v42 = vmax.f32 %v1693_v36, 0.0  ;;  %v1755_v43 = vsel %vm2944_vm0, %v1750_v37, %v1754_v38  ;;  %v1759_v45 = vor.u32 %v1758_v41, %v1754_v38  ;;  %2123 = vmatpush.bf16.msra.mxu2 %v2729_v35  ;;  %2788 = vmatpush.bf16.msra.mxu3 %v2715_v33  ;;  %v2713_v36 = vld [vmem:[%s3406_s4 + $0x18] sm:$0xff]  ;;  %v2712_v37 = vld [vmem:[%s3406_s4 + $0x10] sm:$0xff]  ;;  %v2711_v41 = vld [vmem:[%s3406_s4 + $0x8] sm:$0xff] }
 0x464   : >> { %1785 = vrot.lane.b32.xlu1 %v1755_v43, %s2839_s26  ;;  %v2728_v38 = vld [vmem:[%s3406_s4 + $0x78] sm:$0xff]  ;;  %v2727_v43 = vld [vmem:[%s3406_s4 + $0x70] sm:$0xff] }
 0x465   : >> { %v1705_v7 = vpack.c.bf16 %v1699_v42, %v1699_v42  ;;  %v1760_v30 = vrot.slane %v1759_v45, 4  ;;  %v2718_v42 = vld [vmem:[%s3406_s4 + $0x38] sm:$0xff] }
 0x466   : >> { %v1720_v46 = vld [vmem:[#allocation4 + $0x10] sm:$0xf]  ;;  %2032 = vmatpush.bf16.msra.mxu1 %v2714_v40  ;;  %1968 = vmatpush.bf16.msrb.mxu0 %v2718_v42 }
 0x467   : >> { %v1714_v47 = vsel %vm1712_vm11, %v1705_v7, %v1713_v44  ;;  %v1762_v48 = vshll.u32 %v1720_v46, 16  ;;  %v1766_v49 = vshrl.u32 %v1720_v46, 16  ;;  %2789 = vmatpush.bf16.msra.mxu3 %v2714_v40  ;;  %2124 = vmatpush.bf16.msra.mxu2 %v2728_v38  ;;  %v2710_v44 = vld [vmem:[%s3406_s4] sm:$0xff]  ;;  %v2726_v7 = vld [vmem:[%s3406_s4 + $0x68] sm:$0xff]  ;;  %v2717_v46 = vld [vmem:[%s3406_s4 + $0x30] sm:$0xff] }
 0x468   : >> { %1715 = vst [vmem:[#allocation4 + $0x14] sm:$0x7] %v1714_v47  ;;  %v2725_v47 = vld [vmem:[%s3406_s4 + $0x60] sm:$0xff] }
 0x469   : >> { %v1764_v50 = vrot.slane %v1762_v48, 5  ;;  %v1768_v51 = vrot.slane %v1766_v49, 4 }
 0x46a   : >> { %2033 = vmatpush.bf16.msra.mxu1 %v2713_v36  ;;  %1969 = vmatpush.bf16.msrb.mxu0 %v2717_v46 }
 0x46b   : >> { %v1765_v52 = vsel %vm2944_vm0, %v1760_v30, %v1764_v50  ;;  %v1769_v53 = vor.u32 %v1768_v51, %v1764_v50  ;;  %2790 = vmatpush.bf16.msra.mxu3 %v2713_v36  ;;  %2125 = vmatpush.bf16.msra.mxu2 %v2727_v43 }
 0x46c   : >> { %1787 = vrot.lane.b32.xlu0 %v1765_v52, %s2839_s26 }
 0x46d   : >> { %v1770_v58 = vrot.slane %v1769_v53, 4 }
 0x46e   : >> { %2034 = vmatpush.bf16.msra.mxu1 %v2712_v37 }
 0x46f   : >> { %v1721_v54 = vld [vmem:[#allocation4 + $0x14] sm:$0x7]  ;;  %2791 = vmatpush.bf16.msra.mxu3 %v2712_v37  ;;  %2126 = vmatpush.bf16.msra.mxu2 %v2726_v7 }
 0x470   : >> { %v1772_v56 = vshll.u32 %v1721_v54, 16  ;;  %v1776_v57 = vshrl.u32 %v1721_v54, 16 }
 0x472   : >> { %v1774_v59 = vrot.slane %v1772_v56, 5  ;;  %v1778_v60 = vrot.slane %v1776_v57, 4  ;;  %2035 = vmatpush.bf16.msra.mxu1 %v2711_v41 }
 0x473   : >> { %2792 = vmatpush.bf16.msra.mxu3 %v2711_v41  ;;  %2127 = vmatpush.bf16.msra.mxu2 %v2725_v47 }
 0x474   : >> { %v1775_v61 = vsel %vm2944_vm0, %v1770_v58, %v1774_v59  ;;  %v1779_v62 = vor.u32 %v1778_v60, %v1774_v59  ;;  %vm1858_vm0 = vcmask 779776  }
 0x475   : >> { %1789 = vrot.lane.b32.xlu1 %v1775_v61, %s2839_s26 }
 0x476   : >> { %v1780_v63 = vrot.slane %v1779_v62, 4  ;;  %2036 = vmatpush.bf16.msra.mxu1 %v2710_v44 }
 0x477   : >> { %2793 = vmatpush.bf16.msra.mxu3 %v2710_v44 }
 0x478   : >> { %1791 = vrot.lane.b32.xlu2 %v1780_v63, %s2839_s26 }
 0x4ae   : >> { %v1782_v0 = vpop.permute.xlu2 %1781 }
 0x4af   : >> { %1799 = vst.msk [vmem:[#allocation4] sm:$0xf] %vm626_vm3, %v1782_v0 }
 0x4b6   : >> { %v1806_v3 = vld [vmem:[#allocation4] sm:$0xe] }
 0x4b7   : >> { %v2535_v9 = vrot.slane %v1806_v3, 9 }
 0x4ce   : >> { %v1784_v1 = vpop.permute.xlu0 %1783 }
 0x4cf   : >> { %1800 = vst.msk [vmem:[#allocation4 + $0x4] sm:$0xf] %vm626_vm3, %v1784_v1 }
 0x4d2   : >> { %v1792_v2 = vpop.permute.xlu2 %1791 }
 0x4d3   : >> { %1805 = vst.msk [vmem:[#allocation4 + $0x14] sm:$0x3] %vm1804_vm13, %v1792_v2 }
 0x4d6   : >> { %v1786_v4 = vpop.permute.xlu1 %1785  ;;  %v1807_v5 = vld [vmem:[#allocation4 + $0x4] sm:$0xf] }
 0x4d7   : >> { %1801 = vst.msk [vmem:[#allocation4 + $0x8] sm:$0xf] %vm626_vm3, %v1786_v4  ;;  %v1820_v10 = vrot.slane %v1807_v5, 5 }
 0x4d9   : >> { %v1821_v12 = vsel %vm2995_vm7, %v2535_v9, %v1820_v10  ;;  %v1822_v18 = vrot.slane %v1820_v10, 4 }
 0x4da   : >> { %1835 = vrot.lane.b32.xlu0 %v1821_v12, %s2840_s27  ;;  %v1811_v13 = vld [vmem:[#allocation4 + $0x14] sm:$0x7] }
 0x4db   : >> { %v1832_v15 = vrot.slane %v1811_v13, 5  ;;  %v1861_v50 = vld [vmem:[#allocation4 + $0x14] sm:$0x3] }
 0x4dd   : >> { %v1834_v23 = vrot.slane %v1832_v15, 4 }
 0x4de   : >> { %v1788_v16 = vpop.permute.xlu0 %1787  ;;  %v1808_v17 = vld [vmem:[#allocation4 + $0x8] sm:$0xf] }
 0x4df   : >> { %1802 = vst.msk [vmem:[#allocation4 + $0xc] sm:$0xf] %vm626_vm3, %v1788_v16  ;;  %v1823_v19 = vrot.slane %v1808_v17, 5 }
 0x4e1   : >> { %v1824_v20 = vsel %vm2995_vm7, %v1822_v18, %v1823_v19  ;;  %v1825_v24 = vrot.slane %v1823_v19, 4 }
 0x4e2   : >> { %1837 = vrot.lane.b32.xlu1 %v1824_v20, %s2840_s27  ;;  %1845 = vrot.lane.b32.xlu0 %v1834_v23, %s2840_s27 }
 0x4e6   : >> { %v1809_v21 = vld [vmem:[#allocation4 + $0xc] sm:$0xf] }
 0x4e7   : >> { %v1790_v22 = vpop.permute.xlu1 %1789  ;;  %v1826_v25 = vrot.slane %v1809_v21, 5 }
 0x4e8   : >> { %1803 = vst.msk [vmem:[#allocation4 + $0x10] sm:$0xf] %vm626_vm3, %v1790_v22  ;;  %vm1859_vm3 = vsmask.f32 1280 }
 0x4e9   : >> { %v1827_v26 = vsel %vm2995_vm7, %v1825_v24, %v1826_v25  ;;  %v1828_v39 = vrot.slane %v1826_v25, 4  ;;  %v2143_v24 = vperm.slane %v2893_v8, 3 }
 0x4ea   : >> { %1839 = vrot.lane.b32.xlu2 %v1827_v26, %s2840_s27 }
 0x4ef   : >> { %v1810_v27 = vld [vmem:[#allocation4 + $0x10] sm:$0xf] }
 0x4f0   : >> { %v1829_v28 = vrot.slane %v1810_v27, 5 }
 0x4f2   : >> { %v1830_v29 = vsel %vm2995_vm7, %v1828_v39, %v1829_v28  ;;  %v1831_v31 = vrot.slane %v1829_v28, 4 }
 0x4f3   : >> { %1841 = vrot.lane.b32.xlu1 %v1830_v29, %s2840_s27 }
 0x4f4   : >> { %v1833_v32 = vsel %vm2995_vm7, %v1831_v31, %v1832_v15  ;;  %vm1860_vm7 = vmand %vm1858_vm0, %vm1859_vm3 }
 0x4f5   : >> { %1843 = vrot.lane.b32.xlu2 %v1833_v32, %s2840_s27  ;;  %s2650_s27 = sshll.u32 %s2837_s10, 5  ;;  %s291_s10 = sadd.s32 1, %s2837_s10  }
 0x4f6   : >> { %s2153_s23 = scalar_lea.vmem %s2888_s28, %s2650_s27  ;;  %p288_p4 = scmp.ge.s32.totalorder %s291_s10, 2  }
 0x544   : >> { %v1840_v45 = vpop.permute.xlu2 %1839 }
 0x545   : >> { %1855 = vst.msk [vmem:[#allocation4 + $0x8] sm:$0xf] %vm723_vm8, %v1840_v45 }
 0x54c   : >> { %v1836_v48 = vpop.permute.xlu0 %1835  ;;  %v1866_v54 = vld [vmem:[#allocation4 + $0x8] sm:$0xf] }
 0x54d   : >> { %1853 = vst.msk [vmem:[#allocation4] sm:$0xf] %vm723_vm8, %v1836_v48  ;;  %v1900_v57 = vunpack.c.l.b16 %v1866_v54  ;;  %v2618_v0 = vld [vmem:[#allocation4 + $0x8] sm:$0xe] }
 0x54f   : >> { %v1844_v49 = vpop.permute.xlu2 %1843 }
 0x550   : >> { %1857 = vst.msk [vmem:[#allocation4 + $0x10] sm:$0xf] %vm723_vm8, %v1844_v49 }
 0x554   : >> { %v1838_v30 = vpop.permute.xlu1 %1837  ;;  %v1846_v51 = vpop.permute.xlu0 %1845 }
 0x555   : >> { %1854 = vst.msk [vmem:[#allocation4 + $0x4] sm:$0xf] %vm723_vm8, %v1838_v30  ;;  %v1862_v52 = vsel %vm1860_vm7, %v1846_v51, %v1861_v50 }
 0x556   : >> { %1863 = vst [vmem:[#allocation4 + $0x14] sm:$0x3] %v1862_v52 }
 0x557   : >> { %v2622_v61 = vld [vmem:[#allocation4 + $0x10] sm:$0xf] }
 0x558   : >> { %v2716_v1 = vld [vmem:[#allocation4 + $0xc] sm:$0x30] }
 0x55c   : >> { %v2756_v53 = vld [vmem:[#allocation4] sm:$0xff]  }
 0x55d   : >> { %2602 = vmatmul.msk.bf16.vlgmr.msra.gmra.mxu1 %vm383_vm12, %v2756_v53  ;;  %v2758_v56 = vunpack.c.h.b16 %v2756_v53  ;;  %v2724_v60 = vld [vmem:[#allocation4 + $0x10] sm:$0x70] }
 0x55e   : >> { %v2623_v63 = vor.u32 %v2724_v60, %v2622_v61 }
 0x55f   : >> { %v1903_v59 = vpack.c.b16 %v1900_v57, %v2758_v56 }
 0x560   : >> { %v2076_v10 = vrot.slane %v2623_v63, 1 }
 0x561   : >> { %v1908_v62 = vshll.u32 %v1903_v59, 16  ;;  %v1906_v13 = vshrl.u32 %v1903_v59, 16 }
 0x563   : >> { %v1910_v9 = vrot.slane %v1908_v62, 1 }
 0x565   : >> { %v1842_v58 = vpop.permute.xlu1 %1841  ;;  %v1911_v16 = vor.u32 %v1910_v9, %v1906_v13 }
 0x566   : >> { %1856 = vst.msk [vmem:[#allocation4 + $0xc] sm:$0xf] %vm723_vm8, %v1842_v58  ;;  %vm2154_vm8 = vcmask 261120  }
 0x56d   : >> { %v1867_v2 = vld [vmem:[#allocation4 + $0xc] sm:$0x3] }
 0x56e   : >> { %v2723_v3 = vld [vmem:[#allocation4 + $0x8] sm:$0xf0]  ;;  %v1984_v4 = vunpack.c.l.b16 %v1867_v2 }
 0x56f   : >> { %v2550_v55 = vld [vmem:[#allocation4 + $0xc] sm:$0xf]  ;;  %v2619_v5 = vor.u32 %v2723_v3, %v2618_v0 }
 0x570   : >> { %v2551_v6 = vor.u32 %v2716_v1, %v2550_v55  ;;  %v1986_v11 = vpack.c.b16 %v1984_v4, %v1900_v57 }
 0x571   : >> { %v2075_v12 = vrot.slane %v2619_v5, 1 }
 0x572   : >> { %v1913_v14 = vshll.u32 %v2551_v6, 16  ;;  %2603 = vmatmul.msk.bf16.vlgmr.msra.gmra.mxu3 %vm383_vm12, %v1986_v11  ;;  %v1917_v19 = vshrl.u32 %v2551_v6, 16 }
 0x573   : >> { %v2077_v15 = vsel %vm1029_vm9, %v2075_v12, %v2076_v10 }
 0x574   : >> { %v1915_v17 = vrot.slane %v1913_v14, 1  ;;  %2648 = vmatmul.msk.bf16.vlgmr.msra.gmra.mxu2 %vm383_vm12, %v2077_v15 }
 0x576   : >> { %v1916_v18 = vsel %vm792_vm10, %v1911_v16, %v1915_v17  ;;  %v1919_v23 = vor.u32 %v1917_v19, %v1915_v17 }
 0x577   : >> { %2576 = vmatmul.msk.bf16.vlgmr.msrb.gmra.mxu0 %vm383_vm12, %v1916_v18 }
 0x584   : >> { %2649 = vmatmul.msk.bf16.gmra.mxu2 %vm383_vm12, %v2076_v10 }
 0x587   : >> { %2577 = vmatmul.msk.bf16.gmra.mxu0 %vm383_vm12, %v1919_v23 }
 0x5da   : >> { %v2038_v20 = vpop.f32.mrf.mxu1 }
 0x5e2   : >> { %v2040_v29 = vpop.f32.mrf.mxu1 }
 0x5f4   : >> { %v1971_v21 = vpop.f32.mrf.mxu0 }
 0x5f5   : >> { %v2039_v22 = vadd.f32 %v2038_v20, %v1971_v21  ;;  %v2043_v35 = vpop.f32.mrf.mxu3 }
 0x5f7   : >> { %v2129_v25 = vpop.f32.mrf.mxu2 }
 0x5f8   : >> { %v2139_v26 = vadd.f32 %v2129_v25, %v2039_v22 }
 0x5fa   : >> { %v2144_v27 = vadd.f32 %v2143_v24, %v2139_v26 }
 0x5fc   : >> { %v1973_v39 = vpop.f32.mrf.mxu0  ;;  %v2148_v28 = vmax.f32 %v2144_v27, 0.0 }
 0x5fd   : >> { %v2041_v31 = vadd.f32 %v2040_v29, %v1973_v39  ;;  %v2045_v7 = vpop.f32.mrf.mxu3 }
 0x5fe   : >> { %2155 = vst.msk [vmem:[%s2153_s23] sm:$0xff] %vm2154_vm8, %v2148_v28 }
 0x5ff   : >> { %v2131_v32 = vpop.f32.mrf.mxu2 }
 0x600   : >> { %v2140_v33 = vadd.f32 %v2131_v32, %v2041_v31 }
 0x602   : >> { %v2145_v34 = vadd.f32 %v2143_v24, %v2140_v33 }
 0x604   : >> { %v1976_v40 = vpop.f32.mrf.mxu0  ;;  %v2149_v36 = vmax.f32 %v2145_v34, 0.0 }
 0x605   : >> { %v2044_v37 = vadd.f32 %v2043_v35, %v1976_v40 }
 0x606   : >> { %2156 = vst.msk [vmem:[%s2153_s23 + $0x8] sm:$0xff] %vm2154_vm8, %v2149_v36 }
 0x607   : >> { %v2134_v38 = vpop.f32.mrf.mxu2 }
 0x608   : >> { %v2141_v41 = vadd.f32 %v2134_v38, %v2044_v37 }
 0x60a   : >> { %v2146_v42 = vadd.f32 %v2143_v24, %v2141_v41 }
 0x60c   : >> { %v1978_v43 = vpop.f32.mrf.mxu0  ;;  %v2150_v44 = vmax.f32 %v2146_v42, 0.0 }
 0x60d   : >> { %v2046_v45 = vadd.f32 %v2045_v7, %v1978_v43 }
 0x60e   : >> { %2157 = vst.msk [vmem:[%s2153_s23 + $0x10] sm:$0xff] %vm2154_vm8, %v2150_v44 }
 0x60f   : >> { %v2136_v46 = vpop.f32.mrf.mxu2 }
 0x610   : >> { %v2142_v47 = vadd.f32 %v2136_v46, %v2046_v45 }
 0x612   : >> { %v2147_v48 = vadd.f32 %v2143_v24, %v2142_v47  ;;  %290 = sbr.rel (!%p288_p4) target bundleno = 18 (0x12), region = 89 }
 0x614   : >> { %v2151_v49 = vmax.f32 %v2147_v48, 0.0 }
 0x616   : >> { %2159 = vst.msk [vmem:[%s2153_s23 + $0x18] sm:$0x7] %vm1711_vm6, %v2151_v49 }
 0x617 PF: > { %s16_s21 = sadd.s32 1, %s2833_s21  }
 0x618   : > { %p13_p5 = scmp.ge.s32.totalorder %s16_s21, 4  }
 0x61a   :  { %15 = sbr.rel (!%p13_p5) target bundleno = 1 (0x1), region = 100 }

</bundles_post_ra>
